<compile_context>
chip_gen: v6e
topology: v6e:2x2x1
jax: 0.10.0
libtpu: 0.0.40
codegen_flags: <defaults>
</compile_context>

<pallas_src>
import jax
import jax.numpy as jnp
from jax.experimental import pallas as pl
from jax.experimental.pallas import tpu as pltpu

D_IN, D_H, D_Z = 784, 400, 20
D_IN_PAD = 896          # 7 * 128 : lane-dense recon width
D_Z_PAD = 128           # lane-dense mu / logvar width


def _round_up(x, m):
    return (x + m - 1) // m * m


def vae_kernel(x_ref, eps_ref,
               w1_ref, b1_ref, w2_ref, b2_ref, w3_ref, b3_ref, w4_ref, b4_ref,
               recon_ref, mu_ref, logvar_ref):
    bf16 = jnp.bfloat16

    # ---- encode ---------------------------------------------------------
    x = x_ref[...]                                                  # (TB, 784) f32
    h1 = jnp.dot(x.astype(bf16), w1_ref[...],
                 preferred_element_type=jnp.float32) + b1_ref[...]
    h1 = jnp.maximum(h1, 0.0)                                       # relu (f32)

    # fused mu||logvar projection: w2 = [w21 | 0pad | w22 | 0pad] -> (400, 256)
    ml = jnp.dot(h1.astype(bf16), w2_ref[...],
                 preferred_element_type=jnp.float32) + b2_ref[...]  # (TB, 256)
    mu = ml[:, :D_Z_PAD]                                            # (TB, 128)
    logvar = ml[:, D_Z_PAD:]                                        # (TB, 128)

    # ---- reparameterize: z = mu + eps * exp(0.5 * logvar) ----------------
    std = jnp.exp(0.5 * logvar)
    z = mu + eps_ref[...] * std                                     # pad lanes stay 0

    # ---- decode -----------------------------------------------------------
    h3 = jnp.dot(z.astype(bf16), w3_ref[...],
                 preferred_element_type=jnp.float32) + b3_ref[...]
    h3 = jnp.maximum(h3, 0.0)
    logits = jnp.dot(h3.astype(bf16), w4_ref[...],
                     preferred_element_type=jnp.float32) + b4_ref[...]
    recon = jax.nn.sigmoid(logits)                                  # f32 sigmoid (v5e has no bf16 VPU)

    # lane-dense stores
    recon_ref[...] = recon
    mu_ref[...] = mu
    logvar_ref[...] = logvar


def pack_params(params):
    """Fuse/zero-pad weights to lane-dense shapes and cast weights to bf16."""
    (w1, b1, w21, b21, w22, b22, w3, b3, w4, b4) = params

    # fused mu||logvar weight; each half occupies its own 128-lane slab
    w2 = jnp.zeros((D_H, 2 * D_Z_PAD), jnp.float32)
    w2 = w2.at[:, :D_Z].set(w21).at[:, D_Z_PAD:D_Z_PAD + D_Z].set(w22)
    b2 = jnp.zeros((1, 2 * D_Z_PAD), jnp.float32)
    b2 = b2.at[0, :D_Z].set(b21).at[0, D_Z_PAD:D_Z_PAD + D_Z].set(b22)

    # decoder: zero-pad latent rows 20->128 and output lanes 784->896
    w3p = jnp.zeros((D_Z_PAD, D_H), jnp.float32).at[:D_Z, :].set(w3)
    w4p = jnp.zeros((D_H, D_IN_PAD), jnp.float32).at[:, :D_IN].set(w4)
    b4p = jnp.zeros((1, D_IN_PAD), jnp.float32).at[0, :D_IN].set(b4)

    bf = lambda w: w.astype(jnp.bfloat16)
    return (bf(w1), b1.reshape(1, -1).astype(jnp.float32),
            bf(w2), b2,
            bf(w3p), b3.reshape(1, -1).astype(jnp.float32),
            bf(w4p), b4p)


def vae_forward(x_nchw, eps, params, *, tb=None):
    """x_nchw: (B, 1, 28, 28) f32; eps: (B, 20) f32. Returns (recon, mu, logvar)."""
    B = x_nchw.shape[0]
    x = x_nchw.reshape(B, D_IN).astype(jnp.float32)   # torch's x.view(-1, 784)

    # Batch tile: multiple of 8 sublanes, capped at 512 rows (VMEM-safe on
    # v5e/v6e/v7x); pad the batch up to a whole number of tiles.
    if tb is None:
        tb = min(512, _round_up(B, 8))
    bp = _round_up(B, tb)
    if bp != B:
        x = jnp.pad(x, ((0, bp - B), (0, 0)))
    eps_pad = jnp.zeros((bp, D_Z_PAD), jnp.float32).at[:B, :D_Z].set(eps)

    packed = pack_params(params)
    grid = (bp // tb,)

    def act_spec(d):
        return pl.BlockSpec((tb, d), lambda i: (i, 0))

    def const_spec(shape):
        return pl.BlockSpec(shape, lambda i: (0, 0))   # VMEM-resident across grid

    in_specs = [
        act_spec(D_IN),                    # x
        act_spec(D_Z_PAD),                 # eps
        const_spec((D_IN, D_H)),           # w1  (bf16)
        const_spec((1, D_H)),              # b1
        const_spec((D_H, 2 * D_Z_PAD)),    # w2  fused mu||logvar (bf16)
        const_spec((1, 2 * D_Z_PAD)),      # b2
        const_spec((D_Z_PAD, D_H)),        # w3  (bf16)
        const_spec((1, D_H)),              # b3
        const_spec((D_H, D_IN_PAD)),       # w4  (bf16)
        const_spec((1, D_IN_PAD)),         # b4
    ]
    out_specs = [act_spec(D_IN_PAD), act_spec(D_Z_PAD), act_spec(D_Z_PAD)]
    out_shape = (jax.ShapeDtypeStruct((bp, D_IN_PAD), jnp.float32),
                 jax.ShapeDtypeStruct((bp, D_Z_PAD), jnp.float32),
                 jax.ShapeDtypeStruct((bp, D_Z_PAD), jnp.float32))

    flops = 2 * bp * (D_IN * D_H + D_H * 2 * D_Z + D_Z * D_H + D_H * D_IN)
    bytes_accessed = (
        2 * (D_IN * D_H + D_H * 2 * D_Z_PAD + D_Z_PAD * D_H + D_H * D_IN_PAD)  # bf16 weights
        + 4 * bp * (D_IN + D_Z_PAD)                                            # inputs
        + 4 * bp * (D_IN_PAD + 2 * D_Z_PAD))                                   # outputs
    cost = pl.CostEstimate(flops=flops,
                           transcendentals=bp * (D_Z + D_IN),
                           bytes_accessed=bytes_accessed)

    recon_p, mu_p, lv_p = pl.pallas_call(
        vae_kernel,
        grid_spec=pltpu.PrefetchScalarGridSpec(
            num_scalar_prefetch=0,
            grid=grid,
            in_specs=in_specs,
            out_specs=out_specs),
        out_shape=out_shape,
        compiler_params=pltpu.CompilerParams(
            dimension_semantics=("parallel",)),
        cost_estimate=cost,
    )(x, eps_pad, *packed)

    # slice padded outputs back to logical widths
    return recon_p[:B, :D_IN], mu_p[:B, :D_Z], lv_p[:B, :D_Z]


def init_params(key):
    """Deterministic param init; weights stored as (in, out)."""
    def lin(k, fan_in, fan_out):
        kw, kb = jax.random.split(k)
        bound = 1.0 / jnp.sqrt(fan_in)
        w = jax.random.uniform(kw, (fan_in, fan_out), jnp.float32, -bound, bound)
        b = jax.random.uniform(kb, (fan_out,), jnp.float32, -bound, bound)
        return w, b

    k1, k2, k3, k4, k5 = jax.random.split(key, 5)
    w1, b1 = lin(k1, D_IN, D_H)
    w21, b21 = lin(k2, D_H, D_Z)
    w22, b22 = lin(k3, D_H, D_Z)
    w3, b3 = lin(k4, D_Z, D_H)
    w4, b4 = lin(k5, D_H, D_IN)
    return (w1, b1, w21, b21, w22, b22, w3, b3, w4, b4)


def vae_forward_ref(x_nchw, eps, params):
    """Pure-JAX reference mirroring the kernel's bf16-weight numerics."""
    (w1, b1, w21, b21, w22, b22, w3, b3, w4, b4) = params
    bf = jnp.bfloat16
    x = x_nchw.reshape(x_nchw.shape[0], D_IN)
    h1 = jax.nn.relu(jnp.dot(x.astype(bf), w1.astype(bf),
                             preferred_element_type=jnp.float32) + b1)
    h1b = h1.astype(bf)
    mu = jnp.dot(h1b, w21.astype(bf), preferred_element_type=jnp.float32) + b21
    logvar = jnp.dot(h1b, w22.astype(bf), preferred_element_type=jnp.float32) + b22
    z = mu + eps * jnp.exp(0.5 * logvar)
    h3 = jax.nn.relu(jnp.dot(z.astype(bf), w3.astype(bf),
                             preferred_element_type=jnp.float32) + b3)
    logits = jnp.dot(h3.astype(bf), w4.astype(bf),
                     preferred_element_type=jnp.float32) + b4
    return jax.nn.sigmoid(logits), mu, logvar


if __name__ == "__main__":
    key = jax.random.PRNGKey(0)
    k_x, k_eps, k_p = jax.random.split(key, 3)

    B = 8
    x = jax.random.uniform(k_x, (B, 1, 28, 28), jnp.float32)   # MNIST-like NCHW
    eps = jax.random.normal(k_eps, (B, D_Z), jnp.float32)      # reparam noise
    params = init_params(k_p)

    recon, mu, logvar = vae_forward(x, eps, params)
    jax.block_until_ready((recon, mu, logvar))

    r_ref, m_ref, lv_ref = vae_forward_ref(x, eps, params)
    assert recon.shape == (B, D_IN) and mu.shape == (B, D_Z) and logvar.shape == (B, D_Z)
    assert jnp.allclose(recon, r_ref, atol=1e-3, rtol=1e-3)
    assert jnp.allclose(mu, m_ref, atol=1e-3, rtol=1e-3)
    assert jnp.allclose(logvar, lv_ref, atol=1e-3, rtol=1e-3)

    print("KERNEL_OK")
</pallas_src>

<mosaic_0001>
module attributes {stable_mosaic.version = 11 : i64} {
  func.func @vae_kernel(%arg0: i32, %arg1: memref<8x784xf32, #tpu.memory_space<vmem>>, %arg2: memref<8x128xf32, #tpu.memory_space<vmem>>, %arg3: memref<784x400xbf16, #tpu.memory_space<vmem>>, %arg4: memref<1x400xf32, #tpu.memory_space<vmem>>, %arg5: memref<400x256xbf16, #tpu.memory_space<vmem>>, %arg6: memref<1x256xf32, #tpu.memory_space<vmem>>, %arg7: memref<128x400xbf16, #tpu.memory_space<vmem>>, %arg8: memref<1x400xf32, #tpu.memory_space<vmem>>, %arg9: memref<400x896xbf16, #tpu.memory_space<vmem>>, %arg10: memref<1x896xf32, #tpu.memory_space<vmem>>, %arg11: memref<8x896xf32, #tpu.memory_space<vmem>>, %arg12: memref<8x128xf32, #tpu.memory_space<vmem>>, %arg13: memref<8x128xf32, #tpu.memory_space<vmem>>) attributes {dimension_semantics = [#tpu.dimension_semantics<parallel>], iteration_bounds = array<i64: 1>, scalar_prefetch = 0 : i64, scratch_operands = 0 : i64, tpu.core_type = #tpu.core_type<tc>, window_params = [{transform_indices = @transform_0, window_bounds = array<i64: 8, 784>}, {transform_indices = @transform_1, window_bounds = array<i64: 8, 128>}, {pipeline_mode = #tpu.pipeline_mode<synchronous>, transform_indices = @transform_2, window_bounds = array<i64: 784, 400>}, {pipeline_mode = #tpu.pipeline_mode<synchronous>, transform_indices = @transform_3, window_bounds = array<i64: 1, 400>}, {pipeline_mode = #tpu.pipeline_mode<synchronous>, transform_indices = @transform_4, window_bounds = array<i64: 400, 256>}, {pipeline_mode = #tpu.pipeline_mode<synchronous>, transform_indices = @transform_5, window_bounds = array<i64: 1, 256>}, {pipeline_mode = #tpu.pipeline_mode<synchronous>, transform_indices = @transform_6, window_bounds = array<i64: 128, 400>}, {pipeline_mode = #tpu.pipeline_mode<synchronous>, transform_indices = @transform_7, window_bounds = array<i64: 1, 400>}, {pipeline_mode = #tpu.pipeline_mode<synchronous>, transform_indices = @transform_8, window_bounds = array<i64: 400, 896>}, {pipeline_mode = #tpu.pipeline_mode<synchronous>, transform_indices = @transform_9, window_bounds = array<i64: 1, 896>}, {transform_indices = @transform_10, window_bounds = array<i64: 8, 896>}, {transform_indices = @transform_11, window_bounds = array<i64: 8, 128>}, {transform_indices = @transform_12, window_bounds = array<i64: 8, 128>}]} {
    %c0 = arith.constant 0 : index
    %c0_0 = arith.constant 0 : index
    %0 = vector.load %arg1[%c0, %c0_0] : memref<8x784xf32, #tpu.memory_space<vmem>>, vector<8x784xf32>
    %1 = arith.truncf %0 : vector<8x784xf32> to vector<8x784xbf16>
    %c0_1 = arith.constant 0 : index
    %c0_2 = arith.constant 0 : index
    %2 = vector.load %arg3[%c0_1, %c0_2] : memref<784x400xbf16, #tpu.memory_space<vmem>>, vector<784x400xbf16>
    %cst = arith.constant dense<0.000000e+00> : vector<8x400xf32>
    %3 = tpu.matmul %1, %2, %cst {dimension_numbers = #tpu.dot_dimension_numbers<[1], [0], [0], [1], [0, 0, 1, 1], [], []>} : vector<8x784xbf16>, vector<784x400xbf16>, vector<8x400xf32> -> vector<8x400xf32>
    %c0_3 = arith.constant 0 : index
    %c0_4 = arith.constant 0 : index
    %4 = vector.load %arg4[%c0_3, %c0_4] : memref<1x400xf32, #tpu.memory_space<vmem>>, vector<1x400xf32>
    %5 = vector.broadcast %4 : vector<1x400xf32> to vector<8x400xf32>
    %6 = arith.addf %3, %5 : vector<8x400xf32>
    %cst_5 = arith.constant 0.000000e+00 : f32
    %7 = vector.broadcast %cst_5 : f32 to vector<8x400xf32>
    %8 = arith.maximumf %6, %7 : vector<8x400xf32>
    %9 = arith.truncf %8 : vector<8x400xf32> to vector<8x400xbf16>
    %c0_6 = arith.constant 0 : index
    %c0_7 = arith.constant 0 : index
    %10 = vector.load %arg5[%c0_6, %c0_7] : memref<400x256xbf16, #tpu.memory_space<vmem>>, vector<400x256xbf16>
    %cst_8 = arith.constant dense<0.000000e+00> : vector<8x256xf32>
    %11 = tpu.matmul %9, %10, %cst_8 {dimension_numbers = #tpu.dot_dimension_numbers<[1], [0], [0], [1], [0, 0, 1, 1], [], []>} : vector<8x400xbf16>, vector<400x256xbf16>, vector<8x256xf32> -> vector<8x256xf32>
    %c0_9 = arith.constant 0 : index
    %c0_10 = arith.constant 0 : index
    %12 = vector.load %arg6[%c0_9, %c0_10] : memref<1x256xf32, #tpu.memory_space<vmem>>, vector<1x256xf32>
    %13 = vector.broadcast %12 : vector<1x256xf32> to vector<8x256xf32>
    %14 = arith.addf %11, %13 : vector<8x256xf32>
    %15 = vector.extract_strided_slice %14 {offsets = [0, 0], sizes = [8, 128], strides = [1, 1]} : vector<8x256xf32> to vector<8x128xf32>
    %16 = vector.extract_strided_slice %14 {offsets = [0, 128], sizes = [8, 128], strides = [1, 1]} : vector<8x256xf32> to vector<8x128xf32>
    %cst_11 = arith.constant 5.000000e-01 : f32
    %17 = vector.broadcast %cst_11 : f32 to vector<8x128xf32>
    %18 = arith.mulf %17, %16 : vector<8x128xf32>
    %19 = math.exp %18 : vector<8x128xf32>
    %c0_12 = arith.constant 0 : index
    %c0_13 = arith.constant 0 : index
    %20 = vector.load %arg2[%c0_12, %c0_13] : memref<8x128xf32, #tpu.memory_space<vmem>>, vector<8x128xf32>
    %21 = arith.mulf %20, %19 : vector<8x128xf32>
    %22 = arith.addf %15, %21 : vector<8x128xf32>
    %23 = arith.truncf %22 : vector<8x128xf32> to vector<8x128xbf16>
    %c0_14 = arith.constant 0 : index
    %c0_15 = arith.constant 0 : index
    %24 = vector.load %arg7[%c0_14, %c0_15] : memref<128x400xbf16, #tpu.memory_space<vmem>>, vector<128x400xbf16>
    %cst_16 = arith.constant dense<0.000000e+00> : vector<8x400xf32>
    %25 = tpu.matmul %23, %24, %cst_16 {dimension_numbers = #tpu.dot_dimension_numbers<[1], [0], [0], [1], [0, 0, 1, 1], [], []>} : vector<8x128xbf16>, vector<128x400xbf16>, vector<8x400xf32> -> vector<8x400xf32>
    %c0_17 = arith.constant 0 : index
    %c0_18 = arith.constant 0 : index
    %26 = vector.load %arg8[%c0_17, %c0_18] : memref<1x400xf32, #tpu.memory_space<vmem>>, vector<1x400xf32>
    %27 = vector.broadcast %26 : vector<1x400xf32> to vector<8x400xf32>
    %28 = arith.addf %25, %27 : vector<8x400xf32>
    %cst_19 = arith.constant 0.000000e+00 : f32
    %29 = vector.broadcast %cst_19 : f32 to vector<8x400xf32>
    %30 = arith.maximumf %28, %29 : vector<8x400xf32>
    %31 = arith.truncf %30 : vector<8x400xf32> to vector<8x400xbf16>
    %c0_20 = arith.constant 0 : index
    %c0_21 = arith.constant 0 : index
    %32 = vector.load %arg9[%c0_20, %c0_21] : memref<400x896xbf16, #tpu.memory_space<vmem>>, vector<400x896xbf16>
    %cst_22 = arith.constant dense<0.000000e+00> : vector<8x896xf32>
    %33 = tpu.matmul %31, %32, %cst_22 {dimension_numbers = #tpu.dot_dimension_numbers<[1], [0], [0], [1], [0, 0, 1, 1], [], []>} : vector<8x400xbf16>, vector<400x896xbf16>, vector<8x896xf32> -> vector<8x896xf32>
    %c0_23 = arith.constant 0 : index
    %c0_24 = arith.constant 0 : index
    %34 = vector.load %arg10[%c0_23, %c0_24] : memref<1x896xf32, #tpu.memory_space<vmem>>, vector<1x896xf32>
    %35 = vector.broadcast %34 : vector<1x896xf32> to vector<8x896xf32>
    %36 = arith.addf %33, %35 : vector<8x896xf32>
    %37 = arith.negf %36 : vector<8x896xf32>
    %38 = math.exp %37 : vector<8x896xf32>
    %cst_25 = arith.constant 1.000000e+00 : f32
    %39 = vector.broadcast %cst_25 : f32 to vector<8x896xf32>
    %40 = arith.addf %39, %38 : vector<8x896xf32>
    %41 = arith.divf %39, %40 : vector<8x896xf32>
    %c0_26 = arith.constant 0 : index
    %c0_27 = arith.constant 0 : index
    %42 = vector.load %arg11[%c0_26, %c0_27] : memref<8x896xf32, #tpu.memory_space<vmem>>, vector<8x896xf32>
    tpu.vector_store %arg11[%c0_26, %c0_27], %41 {strides = array<i32>} : memref<8x896xf32, #tpu.memory_space<vmem>>, vector<8x896xf32>,
    %c0_28 = arith.constant 0 : index
    %c0_29 = arith.constant 0 : index
    %43 = vector.load %arg12[%c0_28, %c0_29] : memref<8x128xf32, #tpu.memory_space<vmem>>, vector<8x128xf32>
    tpu.vector_store %arg12[%c0_28, %c0_29], %15 {strides = array<i32>} : memref<8x128xf32, #tpu.memory_space<vmem>>, vector<8x128xf32>,
    %c0_30 = arith.constant 0 : index
    %c0_31 = arith.constant 0 : index
    %44 = vector.load %arg13[%c0_30, %c0_31] : memref<8x128xf32, #tpu.memory_space<vmem>>, vector<8x128xf32>
    tpu.vector_store %arg13[%c0_30, %c0_31], %16 {strides = array<i32>} : memref<8x128xf32, #tpu.memory_space<vmem>>, vector<8x128xf32>,
    return
  }
  func.func @transform_0(%arg0: i32) -> (i32, i32) {
    %c0_i32 = arith.constant 0 : i32
    %c0_i32_0 = arith.constant 0 : i32
    return %arg0, %c0_i32 : i32, i32
  }
  func.func @transform_1(%arg0: i32) -> (i32, i32) {
    %c0_i32 = arith.constant 0 : i32
    %c0_i32_0 = arith.constant 0 : i32
    return %arg0, %c0_i32 : i32, i32
  }
  func.func @transform_2(%arg0: i32) -> (i32, i32) {
    %c0_i32 = arith.constant 0 : i32
    %c0_i32_0 = arith.constant 0 : i32
    %c0_i32_1 = arith.constant 0 : i32
    return %c0_i32, %c0_i32_0 : i32, i32
  }
  func.func @transform_3(%arg0: i32) -> (i32, i32) {
    %c0_i32 = arith.constant 0 : i32
    %c0_i32_0 = arith.constant 0 : i32
    %c0_i32_1 = arith.constant 0 : i32
    return %c0_i32, %c0_i32_0 : i32, i32
  }
  func.func @transform_4(%arg0: i32) -> (i32, i32) {
    %c0_i32 = arith.constant 0 : i32
    %c0_i32_0 = arith.constant 0 : i32
    %c0_i32_1 = arith.constant 0 : i32
    return %c0_i32, %c0_i32_0 : i32, i32
  }
  func.func @transform_5(%arg0: i32) -> (i32, i32) {
    %c0_i32 = arith.constant 0 : i32
    %c0_i32_0 = arith.constant 0 : i32
    %c0_i32_1 = arith.constant 0 : i32
    return %c0_i32, %c0_i32_0 : i32, i32
  }
  func.func @transform_6(%arg0: i32) -> (i32, i32) {
    %c0_i32 = arith.constant 0 : i32
    %c0_i32_0 = arith.constant 0 : i32
    %c0_i32_1 = arith.constant 0 : i32
    return %c0_i32, %c0_i32_0 : i32, i32
  }
  func.func @transform_7(%arg0: i32) -> (i32, i32) {
    %c0_i32 = arith.constant 0 : i32
    %c0_i32_0 = arith.constant 0 : i32
    %c0_i32_1 = arith.constant 0 : i32
    return %c0_i32, %c0_i32_0 : i32, i32
  }
  func.func @transform_8(%arg0: i32) -> (i32, i32) {
    %c0_i32 = arith.constant 0 : i32
    %c0_i32_0 = arith.constant 0 : i32
    %c0_i32_1 = arith.constant 0 : i32
    return %c0_i32, %c0_i32_0 : i32, i32
  }
  func.func @transform_9(%arg0: i32) -> (i32, i32) {
    %c0_i32 = arith.constant 0 : i32
    %c0_i32_0 = arith.constant 0 : i32
    %c0_i32_1 = arith.constant 0 : i32
    return %c0_i32, %c0_i32_0 : i32, i32
  }
  func.func @transform_10(%arg0: i32) -> (i32, i32) {
    %c0_i32 = arith.constant 0 : i32
    %c0_i32_0 = arith.constant 0 : i32
    return %arg0, %c0_i32 : i32, i32
  }
  func.func @transform_11(%arg0: i32) -> (i32, i32) {
    %c0_i32 = arith.constant 0 : i32
    %c0_i32_0 = arith.constant 0 : i32
    return %arg0, %c0_i32 : i32, i32
  }
  func.func @transform_12(%arg0: i32) -> (i32, i32) {
    %c0_i32 = arith.constant 0 : i32
    %c0_i32_0 = arith.constant 0 : i32
    return %arg0, %c0_i32 : i32, i32
  }
}

</mosaic_0001>

<bundles_post_ra>
// kernel: tpu_custom_call.1
= control target key start
LH: loop header
LB: loop body
LE: loop exit
PB: predicated region body
PF: predicated region fallthrough
CT: control target
= control target key end

     0   :  { %18 = vsyncpa [#allocation3], 0  ;;  %vm1253_vm0 = vcmask 130048   ;;  %s6698_s0 = inlined_call_operand.vmem [shape: f32[8,784], index: 0, kind: input, shape index: {}]   ;;  %s6699_s1 = inlined_call_operand.vmem [shape: f32[8,128], index: 1, kind: input, shape index: {}]   ;;  %s6700_s2 = inlined_call_operand.vmem [shape: bf16[784,400], index: 2, kind: input, shape index: {}]   ;;  %s6701_s3 = inlined_call_operand.vmem [shape: f32[1,400], index: 3, kind: input, shape index: {}]   ;;  %s6702_s4 = inlined_call_operand.vmem [shape: bf16[400,256], index: 4, kind: input, shape index: {}]   ;;  %s6703_s5 = inlined_call_operand.vmem [shape: f32[1,256], index: 5, kind: input, shape index: {}]   ;;  %s6704_s6 = inlined_call_operand.vmem [shape: bf16[128,400], index: 6, kind: input, shape index: {}]   ;;  %s6705_s7 = inlined_call_operand.vmem [shape: f32[1,400], index: 7, kind: input, shape index: {}]   ;;  %s6706_s8 = inlined_call_operand.vmem [shape: bf16[400,896], index: 8, kind: input, shape index: {}]   ;;  %s6707_s9 = inlined_call_operand.vmem [shape: f32[1,896], index: 9, kind: input, shape index: {}]   ;;  %s6708_s10 = inlined_call_operand.hbm [shape: f32[8,896], index: 10, kind: output, shape index: {0}]   ;;  %s6709_s11 = inlined_call_operand.hbm [shape: f32[8,128], index: 11, kind: output, shape index: {1}]   ;;  %s6710_s12 = inlined_call_operand.hbm [shape: f32[8,128], index: 12, kind: output, shape index: {2}]  }
   0x1   :  { %v4352_v0 = vld [vmem:[%s6700_s2 + $0xe4] ss:$16 sps:$4 sm:$0xff]   ;;  %v4356_v2 = vld [vmem:[%s6700_s2 + $0xe0] ss:$16 sps:$4 sm:$0xff]   ;;  %v42_v46 = vld [vmem:[%s6698_s0 + $0x8] sm:$0xff] }
   0x2   :  { %v4354_v1 = vld [vmem:[%s6700_s2 + $0x2e4] ss:$16 sps:$4 sm:$0xff]   ;;  %1257 = vmatprep.subr.bf16.mxu0 %v4352_v0  ;;  %v4357_v3 = vld [vmem:[%s6700_s2 + $0x2e0] ss:$16 sps:$4 sm:$0xff]   ;;  %v5329_v49 = vpack.c.bf16 %v42_v46, %v42_v46  ;;  %v44_v50 = vld [vmem:[%s6698_s0 + $0x18] sm:$0xff] }
   0x3   :  { %1298 = vmatprep.subr.bf16.mxu1 %v4354_v1  ;;  %v4358_v4 = vld [vmem:[%s6700_s2 + $0xc4] ss:$16 sps:$4 sm:$0xff]   ;;  %1258 = vmatpush1.bf16.msra.mxu0 %v4356_v2  ;;  %v4362_v6 = vld [vmem:[%s6700_s2 + $0xc0] ss:$16 sps:$4 sm:$0xff]   ;;  %v5337_v52 = vpack.c.bf16 %v44_v50, %v44_v50 }
   0x4   :  { %1299 = vmatpush1.bf16.msra.mxu1 %v4357_v3  ;;  %v4360_v5 = vld [vmem:[%s6700_s2 + $0x2c4] ss:$16 sps:$4 sm:$0xff]   ;;  %1259 = vmatprep.subr.bf16.mxu0 %v4358_v4  ;;  %v4363_v7 = vld [vmem:[%s6700_s2 + $0x2c0] ss:$16 sps:$4 sm:$0xff]  }
   0x5   :  { %1300 = vmatprep.subr.bf16.mxu1 %v4360_v5  ;;  %v4364_v8 = vld [vmem:[%s6700_s2 + $0xa4] ss:$16 sps:$4 sm:$0xff]   ;;  %v4368_v10 = vld [vmem:[%s6700_s2 + $0xa0] ss:$16 sps:$4 sm:$0xff]   ;;  %1289 = vmatprep.mubr.bf16.mxu0 %v5329_v49 }
   0x6   :  { %v4366_v9 = vld [vmem:[%s6700_s2 + $0x2a4] ss:$16 sps:$4 sm:$0xff]   ;;  %v4369_v11 = vld [vmem:[%s6700_s2 + $0x2a0] ss:$16 sps:$4 sm:$0xff]   ;;  %1330 = vmatprep.mubr.bf16.mxu1 %v5337_v52 }
   0x7   :  { %1260 = vmatpush1.bf16.msra.mxu0 %v4362_v6  ;;  %v4370_v12 = vld [vmem:[%s6700_s2 + $0x84] ss:$16 sps:$4 sm:$0xff]   ;;  %v4374_v14 = vld [vmem:[%s6700_s2 + $0x80] ss:$16 sps:$4 sm:$0xff]  }
   0x8   :  { %1301 = vmatpush1.bf16.msra.mxu1 %v4363_v7  ;;  %1261 = vmatprep.subr.bf16.mxu0 %v4364_v8  ;;  %v4372_v13 = vld [vmem:[%s6700_s2 + $0x284] ss:$16 sps:$4 sm:$0xff]   ;;  %v4375_v15 = vld [vmem:[%s6700_s2 + $0x280] ss:$16 sps:$4 sm:$0xff]  }
   0x9   :  { %1302 = vmatprep.subr.bf16.mxu1 %v4366_v9  ;;  %v4376_v16 = vld [vmem:[%s6700_s2 + $0x64] ss:$16 sps:$4 sm:$0xff]   ;;  %v4380_v18 = vld [vmem:[%s6700_s2 + $0x60] ss:$16 sps:$4 sm:$0xff]  }
   0xa   :  { %v4378_v17 = vld [vmem:[%s6700_s2 + $0x264] ss:$16 sps:$4 sm:$0xff]   ;;  %v4381_v19 = vld [vmem:[%s6700_s2 + $0x260] ss:$16 sps:$4 sm:$0xff]  }
   0xb   :  { %1262 = vmatpush1.bf16.msra.mxu0 %v4368_v10  ;;  %v4382_v20 = vld [vmem:[%s6700_s2 + $0x44] ss:$16 sps:$4 sm:$0xff]   ;;  %v4386_v22 = vld [vmem:[%s6700_s2 + $0x40] ss:$16 sps:$4 sm:$0xff]  }
   0xc   :  { %1303 = vmatpush1.bf16.msra.mxu1 %v4369_v11  ;;  %1263 = vmatprep.subr.bf16.mxu0 %v4370_v12  ;;  %v4384_v21 = vld [vmem:[%s6700_s2 + $0x244] ss:$16 sps:$4 sm:$0xff]   ;;  %v4387_v23 = vld [vmem:[%s6700_s2 + $0x240] ss:$16 sps:$4 sm:$0xff]  }
   0xd   :  { %1304 = vmatprep.subr.bf16.mxu1 %v4372_v13  ;;  %v4388_v24 = vld [vmem:[%s6700_s2 + $0x24] ss:$16 sps:$4 sm:$0xff]   ;;  %v4392_v26 = vld [vmem:[%s6700_s2 + $0x20] ss:$16 sps:$4 sm:$0xff]   ;;  %v4459_v13 = vld [vmem:[%s6700_s2 + $0xec] ss:$16 sps:$4 sm:$0xff]  }
   0xe   :  { %v4390_v25 = vld [vmem:[%s6700_s2 + $0x224] ss:$16 sps:$4 sm:$0xff]   ;;  %v4393_v27 = vld [vmem:[%s6700_s2 + $0x220] ss:$16 sps:$4 sm:$0xff]  }
   0xf   :  { %1264 = vmatpush1.bf16.msra.mxu0 %v4374_v14  ;;  %v4394_v28 = vld [vmem:[%s6700_s2 + $0x4] ss:$16 sps:$4 sm:$0xff]   ;;  %v4398_v30 = vld [vmem:[%s6700_s2] ss:$16 sps:$4 sm:$0xff]  }
  0x10   :  { %1305 = vmatpush1.bf16.msra.mxu1 %v4375_v15  ;;  %1265 = vmatprep.subr.bf16.mxu0 %v4376_v16  ;;  %v4396_v29 = vld [vmem:[%s6700_s2 + $0x204] ss:$16 sps:$4 sm:$0xff]   ;;  %v4399_v31 = vld [vmem:[%s6700_s2 + $0x200] ss:$16 sps:$4 sm:$0xff]   ;;  %v5113_v16 = vmov 0  }
  0x11   :  { %1306 = vmatprep.subr.bf16.mxu1 %v4378_v17  ;;  %v4400_v32 = vld [vmem:[%s6700_s2 + $0x1e4] ss:$16 sps:$4 sm:$0xff]   ;;  %v4404_v34 = vld [vmem:[%s6700_s2 + $0x1e0] ss:$16 sps:$4 sm:$0xff]  }
  0x12   :  { %v4402_v33 = vld [vmem:[%s6700_s2 + $0x3e4] ss:$16 sps:$4 sm:$0xff]   ;;  %v4405_v35 = vld [vmem:[%s6700_s2 + $0x3e0] ss:$16 sps:$4 sm:$0xff]  }
  0x13   :  { %1266 = vmatpush1.bf16.msra.mxu0 %v4380_v18  ;;  %v4406_v36 = vld [vmem:[%s6700_s2 + $0x1c4] ss:$16 sps:$4 sm:$0xff]   ;;  %v4410_v38 = vld [vmem:[%s6700_s2 + $0x1c0] ss:$16 sps:$4 sm:$0xff]   ;;  %v4457_v18 = vld [vmem:[%s6700_s2 + $0xe8] ss:$16 sps:$4 sm:$0xff]  }
  0x14   :  { %1307 = vmatpush1.bf16.msra.mxu1 %v4381_v19  ;;  %1267 = vmatprep.subr.bf16.mxu0 %v4382_v20  ;;  %v4408_v37 = vld [vmem:[%s6700_s2 + $0x3c4] ss:$16 sps:$4 sm:$0xff]   ;;  %v4411_v39 = vld [vmem:[%s6700_s2 + $0x3c0] ss:$16 sps:$4 sm:$0xff]  }
  0x15   :  { %1308 = vmatprep.subr.bf16.mxu1 %v4384_v21  ;;  %v4412_v40 = vld [vmem:[%s6700_s2 + $0x1a4] ss:$16 sps:$4 sm:$0xff]   ;;  %v4416_v42 = vld [vmem:[%s6700_s2 + $0x1a0] ss:$16 sps:$4 sm:$0xff]   ;;  %v4465_v21 = vld [vmem:[%s6700_s2 + $0xcc] ss:$16 sps:$4 sm:$0xff]  }
  0x16   :  { %v4414_v41 = vld [vmem:[%s6700_s2 + $0x3a4] ss:$16 sps:$4 sm:$0xff]   ;;  %v4417_v43 = vld [vmem:[%s6700_s2 + $0x3a0] ss:$16 sps:$4 sm:$0xff]  }
  0x17   :  { %1268 = vmatpush1.bf16.msra.mxu0 %v4386_v22  ;;  %v4418_v44 = vld [vmem:[%s6700_s2 + $0x184] ss:$16 sps:$4 sm:$0xff]   ;;  %v4422_v47 = vld [vmem:[%s6700_s2 + $0x180] ss:$16 sps:$4 sm:$0xff]  }
  0x18   :  { %1309 = vmatpush1.bf16.msra.mxu1 %v4387_v23  ;;  %1269 = vmatprep.subr.bf16.mxu0 %v4388_v24  ;;  %v4420_v45 = vld [vmem:[%s6700_s2 + $0x384] ss:$16 sps:$4 sm:$0xff]   ;;  %v4423_v48 = vld [vmem:[%s6700_s2 + $0x380] ss:$16 sps:$4 sm:$0xff]   ;;  %v4463_v23 = vld [vmem:[%s6700_s2 + $0xc8] ss:$16 sps:$4 sm:$0xff]  }
  0x19   :  { %1310 = vmatprep.subr.bf16.mxu1 %v4390_v25  ;;  %v4424_v51 = vld [vmem:[%s6700_s2 + $0x164] ss:$16 sps:$4 sm:$0xff]   ;;  %v4428_v54 = vld [vmem:[%s6700_s2 + $0x160] ss:$16 sps:$4 sm:$0xff]   ;;  %v4471_v25 = vld [vmem:[%s6700_s2 + $0xac] ss:$16 sps:$4 sm:$0xff]  }
  0x1a   :  { %v4426_v53 = vld [vmem:[%s6700_s2 + $0x364] ss:$16 sps:$4 sm:$0xff]   ;;  %v4429_v55 = vld [vmem:[%s6700_s2 + $0x360] ss:$16 sps:$4 sm:$0xff]  }
  0x1b   :  { %1270 = vmatpush1.bf16.msra.mxu0 %v4392_v26  ;;  %v4430_v56 = vld [vmem:[%s6700_s2 + $0x144] ss:$16 sps:$4 sm:$0xff]   ;;  %v4434_v58 = vld [vmem:[%s6700_s2 + $0x140] ss:$16 sps:$4 sm:$0xff]  }
  0x1c   :  { %1311 = vmatpush1.bf16.msra.mxu1 %v4393_v27  ;;  %1271 = vmatprep.subr.bf16.mxu0 %v4394_v28  ;;  %v4432_v57 = vld [vmem:[%s6700_s2 + $0x344] ss:$16 sps:$4 sm:$0xff]   ;;  %v4435_v59 = vld [vmem:[%s6700_s2 + $0x340] ss:$16 sps:$4 sm:$0xff]   ;;  %v4469_v27 = vld [vmem:[%s6700_s2 + $0xa8] ss:$16 sps:$4 sm:$0xff]  }
  0x1d   :  { %1312 = vmatprep.subr.bf16.mxu1 %v4396_v29  ;;  %v4436_v60 = vld [vmem:[%s6700_s2 + $0x124] ss:$16 sps:$4 sm:$0xff]   ;;  %v4440_v62 = vld [vmem:[%s6700_s2 + $0x120] ss:$16 sps:$4 sm:$0xff]   ;;  %v4477_v29 = vld [vmem:[%s6700_s2 + $0x8c] ss:$16 sps:$4 sm:$0xff]  }
  0x1e   :  { %v4438_v61 = vld [vmem:[%s6700_s2 + $0x324] ss:$16 sps:$4 sm:$0xff]   ;;  %v4441_v63 = vld [vmem:[%s6700_s2 + $0x320] ss:$16 sps:$4 sm:$0xff]  }
  0x1f   :  { %1272 = vmatpush1.bf16.msra.mxu0 %v4398_v30  ;;  %v4442_v0 = vld [vmem:[%s6700_s2 + $0x104] ss:$16 sps:$4 sm:$0xff]   ;;  %v4446_v2 = vld [vmem:[%s6700_s2 + $0x100] ss:$16 sps:$4 sm:$0xff]  }
  0x20   :  { %1313 = vmatpush1.bf16.msra.mxu1 %v4399_v31  ;;  %1273 = vmatprep.subr.bf16.mxu0 %v4400_v32  ;;  %v4444_v1 = vld [vmem:[%s6700_s2 + $0x304] ss:$16 sps:$4 sm:$0xff]   ;;  %v4447_v3 = vld [vmem:[%s6700_s2 + $0x300] ss:$16 sps:$4 sm:$0xff]   ;;  %v4475_v31 = vld [vmem:[%s6700_s2 + $0x88] ss:$16 sps:$4 sm:$0xff]  }
  0x21   :  { %1314 = vmatprep.subr.bf16.mxu1 %v4402_v33  ;;  %v41_v4 = vld [vmem:[%s6698_s0] sm:$0xff]  ;;  %v43_v5 = vld [vmem:[%s6698_s0 + $0x10] sm:$0xff]  ;;  %v4483_v33 = vld [vmem:[%s6700_s2 + $0x6c] ss:$16 sps:$4 sm:$0xff]  }
  0x22   :  { %v4450_v6 = vld [vmem:[%s6700_s2 + $0x4e4] ss:$16 sps:$4 sm:$0xff]   ;;  %v5398_v8 = vpack.c.bf16 %v41_v4, %v41_v4  ;;  %v5400_v9 = vpack.c.bf16 %v43_v5, %v43_v5  ;;  %v4448_v10 = vld [vmem:[%s6700_s2 + $0x4e0] ss:$16 sps:$4 sm:$0xff]   ;;  %v4531_v4 = vld [vmem:[%s6700_s2 + $0x16c] ss:$16 sps:$4 sm:$0xff]  }
  0x23   :  { %1274 = vmatpush2.bf16.msra.mxu0 %v4404_v34  ;;  %v4453_v7 = vld [vmem:[%s6700_s2 + $0x604] ss:$16 sps:$4 sm:$0xff]   ;;  %v4451_v11 = vld [vmem:[%s6700_s2 + $0x600] ss:$16 sps:$4 sm:$0xff]  }
  0x24   :  { %1315 = vmatpush2.bf16.msra.mxu1 %v4405_v35  ;;  %1275 = vmatprep.subr.bf16.mxu0 %v4406_v36  ;;  %v4456_v12 = vld [vmem:[%s6700_s2 + $0x4c4] ss:$16 sps:$4 sm:$0xff]   ;;  %v4454_v14 = vld [vmem:[%s6700_s2 + $0x4c0] ss:$16 sps:$4 sm:$0xff]   ;;  %v46_v35 = vld [vmem:[%s6698_s0 + $0x28] sm:$0xff] }
  0x25   :  { %1316 = vmatprep.subr.bf16.mxu1 %v4408_v37  ;;  %v47_v15 = vld [vmem:[%s6698_s0 + $0x30] sm:$0xff]  ;;  %v5482_v36 = vpack.c.bf16 %v46_v35, %v46_v35  ;;  %v4481_v37 = vld [vmem:[%s6700_s2 + $0x68] ss:$16 sps:$4 sm:$0xff]  }
  0x26   :  { %v4462_v17 = vld [vmem:[%s6700_s2 + $0x4a4] ss:$16 sps:$4 sm:$0xff]   ;;  %v5429_v19 = vpack.c.bf16 %v47_v15, %v47_v15  ;;  %v4460_v20 = vld [vmem:[%s6700_s2 + $0x4a0] ss:$16 sps:$4 sm:$0xff]   ;;  %v4565_v35 = vld [vmem:[%s6700_s2 + $0x4a8] ss:$16 sps:$4 sm:$0xff]  }
  0x27   :  { %1276 = vmatpush2.bf16.msra.mxu0 %v4410_v38  ;;  %v4468_v22 = vld [vmem:[%s6700_s2 + $0x484] ss:$16 sps:$4 sm:$0xff]   ;;  %v4466_v24 = vld [vmem:[%s6700_s2 + $0x480] ss:$16 sps:$4 sm:$0xff]  }
  0x28   :  { %1317 = vmatpush2.bf16.msra.mxu1 %v4411_v39  ;;  %1277 = vmatprep.subr.bf16.mxu0 %v4412_v40  ;;  %v4474_v26 = vld [vmem:[%s6700_s2 + $0x464] ss:$16 sps:$4 sm:$0xff]   ;;  %v4472_v28 = vld [vmem:[%s6700_s2 + $0x460] ss:$16 sps:$4 sm:$0xff]   ;;  %v4489_v39 = vld [vmem:[%s6700_s2 + $0x4c] ss:$16 sps:$4 sm:$0xff]  }
  0x29   :  { %1318 = vmatprep.subr.bf16.mxu1 %v4414_v41  ;;  %v4480_v30 = vld [vmem:[%s6700_s2 + $0x444] ss:$16 sps:$4 sm:$0xff]   ;;  %v4478_v32 = vld [vmem:[%s6700_s2 + $0x440] ss:$16 sps:$4 sm:$0xff]   ;;  %v4487_v41 = vld [vmem:[%s6700_s2 + $0x48] ss:$16 sps:$4 sm:$0xff]  }
  0x2a   :  { %v4486_v34 = vld [vmem:[%s6700_s2 + $0x424] ss:$16 sps:$4 sm:$0xff]   ;;  %v4484_v38 = vld [vmem:[%s6700_s2 + $0x420] ss:$16 sps:$4 sm:$0xff]  }
  0x2b   :  { %1278 = vmatpush2.bf16.msra.mxu0 %v4416_v42  ;;  %v4492_v40 = vld [vmem:[%s6700_s2 + $0x404] ss:$16 sps:$4 sm:$0xff]   ;;  %v4490_v42 = vld [vmem:[%s6700_s2 + $0x400] ss:$16 sps:$4 sm:$0xff]  }
  0x2c   :  { %1319 = vmatpush2.bf16.msra.mxu1 %v4417_v43  ;;  %1279 = vmatprep.subr.bf16.mxu0 %v4418_v44  ;;  %v4495_v43 = vld [vmem:[%s6700_s2 + $0x2c] ss:$16 sps:$4 sm:$0xff]   ;;  %v4498_v44 = vld [vmem:[%s6700_s2 + $0x5e4] ss:$16 sps:$4 sm:$0xff]   ;;  %v4496_v46 = vld [vmem:[%s6700_s2 + $0x5e0] ss:$16 sps:$4 sm:$0xff]  }
  0x2d   :  { %1320 = vmatprep.subr.bf16.mxu1 %v4420_v45  ;;  %v4493_v45 = vld [vmem:[%s6700_s2 + $0x28] ss:$16 sps:$4 sm:$0xff]   ;;  %v4502_v50 = vld [vmem:[%s6700_s2 + $0x5c0] ss:$16 sps:$4 sm:$0xff]   ;;  %v4534_v5 = vld [vmem:[%s6700_s2 + $0x524] ss:$16 sps:$4 sm:$0xff]  }
  0x2e   :  { %v45_v15 = vld [vmem:[%s6698_s0 + $0x20] sm:$0xff] }
  0x2f   :  { %1280 = vmatpush2.bf16.msra.mxu0 %v4422_v47  ;;  %v4501_v47 = vld [vmem:[%s6700_s2 + $0xc] ss:$16 sps:$4 sm:$0xff]  }
  0x30   :  { %1321 = vmatpush2.bf16.msra.mxu1 %v4423_v48  ;;  %1281 = vmatprep.subr.bf16.mxu0 %v4424_v51  ;;  %v4504_v48 = vld [vmem:[%s6700_s2 + $0x5c4] ss:$16 sps:$4 sm:$0xff]   ;;  %v4507_v51 = vld [vmem:[%s6700_s2 + $0x1ec] ss:$16 sps:$4 sm:$0xff]  }
  0x31   :  { %1322 = vmatprep.subr.bf16.mxu1 %v4426_v53  ;;  %v4510_v53 = vld [vmem:[%s6700_s2 + $0x5a4] ss:$16 sps:$4 sm:$0xff]  }
  0x33   :  { %1282 = vmatpush2.bf16.msra.mxu0 %v4428_v54  ;;  %v4505_v54 = vld [vmem:[%s6700_s2 + $0x1e8] ss:$16 sps:$4 sm:$0xff]  }
  0x34   :  { %1323 = vmatpush2.bf16.msra.mxu1 %v4429_v55  ;;  %1283 = vmatprep.subr.bf16.mxu0 %v4430_v56  ;;  %v4508_v55 = vld [vmem:[%s6700_s2 + $0x5a0] ss:$16 sps:$4 sm:$0xff]   ;;  %v4513_v56 = vld [vmem:[%s6700_s2 + $0x1cc] ss:$16 sps:$4 sm:$0xff]  }
  0x35   :  { %1324 = vmatprep.subr.bf16.mxu1 %v4432_v57  ;;  %v4516_v57 = vld [vmem:[%s6700_s2 + $0x584] ss:$16 sps:$4 sm:$0xff]  }
  0x37   :  { %1284 = vmatpush2.bf16.msra.mxu0 %v4434_v58  ;;  %v4511_v58 = vld [vmem:[%s6700_s2 + $0x1c8] ss:$16 sps:$4 sm:$0xff]  }
  0x38   :  { %1325 = vmatpush2.bf16.msra.mxu1 %v4435_v59  ;;  %1285 = vmatprep.subr.bf16.mxu0 %v4436_v60  ;;  %v4514_v59 = vld [vmem:[%s6700_s2 + $0x580] ss:$16 sps:$4 sm:$0xff]   ;;  %v4519_v60 = vld [vmem:[%s6700_s2 + $0x1ac] ss:$16 sps:$4 sm:$0xff]  }
  0x39   :  { %1326 = vmatprep.subr.bf16.mxu1 %v4438_v61  ;;  %v4522_v61 = vld [vmem:[%s6700_s2 + $0x564] ss:$16 sps:$4 sm:$0xff]  }
  0x3b   :  { %1286 = vmatpush2.bf16.msra.mxu0 %v4440_v62  ;;  %v4517_v62 = vld [vmem:[%s6700_s2 + $0x1a8] ss:$16 sps:$4 sm:$0xff]  }
  0x3c   :  { %1327 = vmatpush2.bf16.msra.mxu1 %v4441_v63  ;;  %1287 = vmatprep.subr.bf16.mxu0 %v4442_v0  ;;  %v4520_v63 = vld [vmem:[%s6700_s2 + $0x560] ss:$16 sps:$4 sm:$0xff]   ;;  %v4525_v0 = vld [vmem:[%s6700_s2 + $0x18c] ss:$16 sps:$4 sm:$0xff]  }
  0x3d   :  { %1328 = vmatprep.subr.bf16.mxu1 %v4444_v1  ;;  %v4528_v1 = vld [vmem:[%s6700_s2 + $0x544] ss:$16 sps:$4 sm:$0xff]  }
  0x3f   :  { %1288 = vmatpush2.bf16.msra.mxu0 %v4446_v2  ;;  %v4523_v2 = vld [vmem:[%s6700_s2 + $0x188] ss:$16 sps:$4 sm:$0xff]  }
  0x40   :  { %1329 = vmatpush2.bf16.msra.mxu1 %v4447_v3  ;;  %1339 = vmatprep.subr.bf16.mxu0 %v4450_v6  ;;  %v4526_v3 = vld [vmem:[%s6700_s2 + $0x540] ss:$16 sps:$4 sm:$0xff]   ;;  %v4529_v6 = vld [vmem:[%s6700_s2 + $0x168] ss:$16 sps:$4 sm:$0xff]  }
  0x41   :  { %1394 = vmatprep.subr.bf16.mxu1 %v4453_v7  ;;  %v4532_v7 = vld [vmem:[%s6700_s2 + $0x520] ss:$16 sps:$4 sm:$0xff]  }
  0x42   :  { %1290 = vmatmul.mubr.bf16.vlgmr.msra.gmra.mxu0 %v5398_v8 }
  0x43   :  { %1331 = vmatmul.mubr.bf16.vlgmr.msra.gmra.mxu1 %v5400_v9  ;;  %1340 = vmatpush1.bf16.msra.mxu0 %v4448_v10  ;;  %v4537_v10 = vld [vmem:[%s6700_s2 + $0x14c] ss:$16 sps:$4 sm:$0xff]  }
  0x44   :  { %1395 = vmatpush1.bf16.msra.mxu1 %v4451_v11  ;;  %1341 = vmatprep.subr.bf16.mxu0 %v4456_v12  ;;  %v4540_v11 = vld [vmem:[%s6700_s2 + $0x504] ss:$16 sps:$4 sm:$0xff]   ;;  %v4535_v12 = vld [vmem:[%s6700_s2 + $0x148] ss:$16 sps:$4 sm:$0xff]  }
  0x45   :  { %1412 = vmatprep.mubr.bf16.mxu1 %v5113_v16  ;;  %1421 = vmatprep.subr.bf16.mxu1 %v4459_v13  ;;  %v4538_v13 = vld [vmem:[%s6700_s2 + $0x500] ss:$16 sps:$4 sm:$0xff]  }
  0x46   :  { %1371 = vmatprep.mubr.bf16.mxu0 %v5482_v36 }
  0x47   :  { %1342 = vmatpush1.bf16.msra.mxu0 %v4454_v14  ;;  %v4543_v14 = vld [vmem:[%s6700_s2 + $0x12c] ss:$16 sps:$4 sm:$0xff]  }
  0x48   :  { %1343 = vmatprep.subr.bf16.mxu0 %v4462_v17  ;;  %v4546_v17 = vld [vmem:[%s6700_s2 + $0x2ec] ss:$16 sps:$4 sm:$0xff]  }
  0x4b   :  { %4055 = vmatmul.mubr.msk.bf16.vlgmr.msra.gmra.mxu1 %vm1253_vm0, %v5429_v19  ;;  %1344 = vmatpush1.bf16.msra.mxu0 %v4460_v20  ;;  %v5611_v20 = vpack.c.bf16 %v45_v15, %v45_v15  ;;  %v4633_v15 = vld [vmem:[%s6700_s2 + $0x54c] ss:$16 sps:$4 sm:$0xff]  }
  0x4c   :  { %1422 = vmatpush1.bf16.msra.mxu1 %v4457_v18  ;;  %1345 = vmatprep.subr.bf16.mxu0 %v4468_v22  ;;  %v4541_v18 = vld [vmem:[%s6700_s2 + $0x128] ss:$16 sps:$4 sm:$0xff]   ;;  %v4549_v22 = vld [vmem:[%s6700_s2 + $0x10c] ss:$16 sps:$4 sm:$0xff]  }
  0x4d   :  { %1423 = vmatprep.subr.bf16.mxu1 %v4465_v21  ;;  %1453 = vmatprep.mubr.bf16.mxu1 %v5329_v49  ;;  %v4499_v49 = vld [vmem:[%s6700_s2 + $0x8] ss:$16 sps:$4 sm:$0xff]  }
  0x4e   :  { %v4544_v21 = vld [vmem:[%s6700_s2 + $0x2e8] ss:$16 sps:$4 sm:$0xff]  }
  0x4f   :  { %1346 = vmatpush1.bf16.msra.mxu0 %v4466_v24  ;;  %v4547_v24 = vld [vmem:[%s6700_s2 + $0x108] ss:$16 sps:$4 sm:$0xff]  }
  0x50   :  { %1424 = vmatpush1.bf16.msra.mxu1 %v4463_v23  ;;  %1347 = vmatprep.subr.bf16.mxu0 %v4474_v26  ;;  %v4552_v23 = vld [vmem:[%s6700_s2 + $0x2cc] ss:$16 sps:$4 sm:$0xff]  }
  0x51   :  { %1425 = vmatprep.subr.bf16.mxu1 %v4471_v25  ;;  %v4550_v25 = vld [vmem:[%s6700_s2 + $0x2c8] ss:$16 sps:$4 sm:$0xff]   ;;  %v4555_v26 = vld [vmem:[%s6700_s2 + $0x4ec] ss:$16 sps:$4 sm:$0xff]  }
  0x53   :  { %1348 = vmatpush1.bf16.msra.mxu0 %v4472_v28  ;;  %v4553_v28 = vld [vmem:[%s6700_s2 + $0x4e8] ss:$16 sps:$4 sm:$0xff]  }
  0x54   :  { %1426 = vmatpush1.bf16.msra.mxu1 %v4469_v27  ;;  %1349 = vmatprep.subr.bf16.mxu0 %v4480_v30  ;;  %v4558_v27 = vld [vmem:[%s6700_s2 + $0x2ac] ss:$16 sps:$4 sm:$0xff]  }
  0x55   :  { %1427 = vmatprep.subr.bf16.mxu1 %v4477_v29  ;;  %v4556_v29 = vld [vmem:[%s6700_s2 + $0x2a8] ss:$16 sps:$4 sm:$0xff]   ;;  %v4561_v30 = vld [vmem:[%s6700_s2 + $0x4cc] ss:$16 sps:$4 sm:$0xff]  }
  0x57   :  { %1350 = vmatpush1.bf16.msra.mxu0 %v4478_v32  ;;  %v4559_v32 = vld [vmem:[%s6700_s2 + $0x4c8] ss:$16 sps:$4 sm:$0xff]  }
  0x58   :  { %1428 = vmatpush1.bf16.msra.mxu1 %v4475_v31  ;;  %1351 = vmatprep.subr.bf16.mxu0 %v4486_v34  ;;  %v4564_v31 = vld [vmem:[%s6700_s2 + $0x28c] ss:$16 sps:$4 sm:$0xff]  }
  0x59   :  { %1429 = vmatprep.subr.bf16.mxu1 %v4483_v33  ;;  %v4567_v33 = vld [vmem:[%s6700_s2 + $0x4ac] ss:$16 sps:$4 sm:$0xff]  }
  0x5a   :  { %v4570_v34 = vld [vmem:[%s6700_s2 + $0x26c] ss:$16 sps:$4 sm:$0xff]  }
  0x5b   :  { %1352 = vmatpush1.bf16.msra.mxu0 %v4484_v38  ;;  %v4576_v38 = vld [vmem:[%s6700_s2 + $0x24c] ss:$16 sps:$4 sm:$0xff]  }
  0x5c   :  { %1430 = vmatpush1.bf16.msra.mxu1 %v4481_v37  ;;  %1353 = vmatprep.subr.bf16.mxu0 %v4492_v40  ;;  %v4573_v37 = vld [vmem:[%s6700_s2 + $0x48c] ss:$16 sps:$4 sm:$0xff]  }
  0x5d   :  { %1431 = vmatprep.subr.bf16.mxu1 %v4489_v39  ;;  %v4574_v39 = vld [vmem:[%s6700_s2 + $0x248] ss:$16 sps:$4 sm:$0xff]   ;;  %v4579_v40 = vld [vmem:[%s6700_s2 + $0x46c] ss:$16 sps:$4 sm:$0xff]  }
  0x5f   :  { %1354 = vmatpush1.bf16.msra.mxu0 %v4490_v42  ;;  %v4577_v42 = vld [vmem:[%s6700_s2 + $0x468] ss:$16 sps:$4 sm:$0xff]  }
  0x60   :  { %1432 = vmatpush1.bf16.msra.mxu1 %v4487_v41  ;;  %1355 = vmatprep.subr.bf16.mxu0 %v4498_v44  ;;  %v4582_v41 = vld [vmem:[%s6700_s2 + $0x22c] ss:$16 sps:$4 sm:$0xff]  }
  0x61   :  { %1433 = vmatprep.subr.bf16.mxu1 %v4495_v43  ;;  %v4580_v43 = vld [vmem:[%s6700_s2 + $0x228] ss:$16 sps:$4 sm:$0xff]   ;;  %v4585_v44 = vld [vmem:[%s6700_s2 + $0x44c] ss:$16 sps:$4 sm:$0xff]  }
  0x63   :  { %1356 = vmatpush2.bf16.msra.mxu0 %v4496_v46  ;;  %v4583_v46 = vld [vmem:[%s6700_s2 + $0x448] ss:$16 sps:$4 sm:$0xff]  }
  0x64   :  { %1434 = vmatpush1.bf16.msra.mxu1 %v4493_v45  ;;  %1357 = vmatprep.subr.bf16.mxu0 %v4504_v48  ;;  %v4588_v45 = vld [vmem:[%s6700_s2 + $0x20c] ss:$16 sps:$4 sm:$0xff]  }
  0x65   :  { %1435 = vmatprep.subr.bf16.mxu1 %v4501_v47  ;;  %v4586_v47 = vld [vmem:[%s6700_s2 + $0x208] ss:$16 sps:$4 sm:$0xff]   ;;  %v4591_v48 = vld [vmem:[%s6700_s2 + $0x42c] ss:$16 sps:$4 sm:$0xff]  }
  0x67   :  { %1358 = vmatpush2.bf16.msra.mxu0 %v4502_v50  ;;  %v4589_v50 = vld [vmem:[%s6700_s2 + $0x428] ss:$16 sps:$4 sm:$0xff]  }
  0x68   :  { %1436 = vmatpush1.bf16.msra.mxu1 %v4499_v49  ;;  %1359 = vmatprep.subr.bf16.mxu0 %v4510_v53  ;;  %v4594_v49 = vld [vmem:[%s6700_s2 + $0x3ec] ss:$16 sps:$4 sm:$0xff]  }
  0x69   :  { %1437 = vmatprep.subr.bf16.mxu1 %v4507_v51  ;;  %v4592_v51 = vld [vmem:[%s6700_s2 + $0x3e8] ss:$16 sps:$4 sm:$0xff]   ;;  %v4597_v53 = vld [vmem:[%s6700_s2 + $0x40c] ss:$16 sps:$4 sm:$0xff]  }
  0x6b   :  { %1360 = vmatpush2.bf16.msra.mxu0 %v4508_v55  ;;  %v4595_v55 = vld [vmem:[%s6700_s2 + $0x408] ss:$16 sps:$4 sm:$0xff]  }
  0x6c   :  { %1438 = vmatpush2.bf16.msra.mxu1 %v4505_v54  ;;  %1361 = vmatprep.subr.bf16.mxu0 %v4516_v57  ;;  %v4600_v54 = vld [vmem:[%s6700_s2 + $0x3cc] ss:$16 sps:$4 sm:$0xff]  }
  0x6d   :  { %1439 = vmatprep.subr.bf16.mxu1 %v4513_v56  ;;  %v4598_v56 = vld [vmem:[%s6700_s2 + $0x3c8] ss:$16 sps:$4 sm:$0xff]   ;;  %v4603_v57 = vld [vmem:[%s6700_s2 + $0x5ec] ss:$16 sps:$4 sm:$0xff]  }
  0x6f   :  { %1362 = vmatpush2.bf16.msra.mxu0 %v4514_v59  ;;  %v4601_v59 = vld [vmem:[%s6700_s2 + $0x5e8] ss:$16 sps:$4 sm:$0xff]  }
  0x70   :  { %1440 = vmatpush2.bf16.msra.mxu1 %v4511_v58  ;;  %1363 = vmatprep.subr.bf16.mxu0 %v4522_v61  ;;  %v4606_v58 = vld [vmem:[%s6700_s2 + $0x3ac] ss:$16 sps:$4 sm:$0xff]  }
  0x71   :  { %1441 = vmatprep.subr.bf16.mxu1 %v4519_v60  ;;  %v4604_v60 = vld [vmem:[%s6700_s2 + $0x3a8] ss:$16 sps:$4 sm:$0xff]   ;;  %v4609_v61 = vld [vmem:[%s6700_s2 + $0x5cc] ss:$16 sps:$4 sm:$0xff]  }
  0x73   :  { %1364 = vmatpush2.bf16.msra.mxu0 %v4520_v63  ;;  %v4607_v63 = vld [vmem:[%s6700_s2 + $0x5c8] ss:$16 sps:$4 sm:$0xff]  }
  0x74   :  { %1442 = vmatpush2.bf16.msra.mxu1 %v4517_v62  ;;  %1365 = vmatprep.subr.bf16.mxu0 %v4528_v1  ;;  %v4612_v62 = vld [vmem:[%s6700_s2 + $0x38c] ss:$16 sps:$4 sm:$0xff]  }
  0x75   :  { %1443 = vmatprep.subr.bf16.mxu1 %v4525_v0  ;;  %v4610_v0 = vld [vmem:[%s6700_s2 + $0x388] ss:$16 sps:$4 sm:$0xff]   ;;  %v4615_v1 = vld [vmem:[%s6700_s2 + $0x5ac] ss:$16 sps:$4 sm:$0xff]  }
  0x77   :  { %1366 = vmatpush2.bf16.msra.mxu0 %v4526_v3  ;;  %v4613_v3 = vld [vmem:[%s6700_s2 + $0x5a8] ss:$16 sps:$4 sm:$0xff]  }
  0x78   :  { %1444 = vmatpush2.bf16.msra.mxu1 %v4523_v2  ;;  %1367 = vmatprep.subr.bf16.mxu0 %v4534_v5  ;;  %v4618_v2 = vld [vmem:[%s6700_s2 + $0x36c] ss:$16 sps:$4 sm:$0xff]  }
  0x79   :  { %1445 = vmatprep.subr.bf16.mxu1 %v4531_v4  ;;  %v4616_v4 = vld [vmem:[%s6700_s2 + $0x368] ss:$16 sps:$4 sm:$0xff]   ;;  %v4621_v5 = vld [vmem:[%s6700_s2 + $0x58c] ss:$16 sps:$4 sm:$0xff]  }
  0x7b   :  { %1368 = vmatpush2.bf16.msra.mxu0 %v4532_v7  ;;  %v4619_v7 = vld [vmem:[%s6700_s2 + $0x588] ss:$16 sps:$4 sm:$0xff]  }
  0x7c   :  { %1446 = vmatpush2.bf16.msra.mxu1 %v4529_v6  ;;  %1369 = vmatprep.subr.bf16.mxu0 %v4540_v11  ;;  %v4624_v6 = vld [vmem:[%s6700_s2 + $0x34c] ss:$16 sps:$4 sm:$0xff]  }
  0x7d   :  { %1447 = vmatprep.subr.bf16.mxu1 %v4537_v10  ;;  %v4622_v10 = vld [vmem:[%s6700_s2 + $0x348] ss:$16 sps:$4 sm:$0xff]   ;;  %v4627_v11 = vld [vmem:[%s6700_s2 + $0x56c] ss:$16 sps:$4 sm:$0xff]  }
  0x7f   :  { %1370 = vmatpush2.bf16.msra.mxu0 %v4538_v13  ;;  %v4625_v13 = vld [vmem:[%s6700_s2 + $0x568] ss:$16 sps:$4 sm:$0xff]  }
  0x80   :  { %1448 = vmatpush2.bf16.msra.mxu1 %v4535_v12  ;;  %1462 = vmatprep.subr.bf16.mxu0 %v4546_v17  ;;  %v4630_v12 = vld [vmem:[%s6700_s2 + $0x32c] ss:$16 sps:$4 sm:$0xff]  }
  0x81   :  { %1449 = vmatprep.subr.bf16.mxu1 %v4543_v14  ;;  %v4628_v14 = vld [vmem:[%s6700_s2 + $0x328] ss:$16 sps:$4 sm:$0xff]   ;;  %v4636_v17 = vld [vmem:[%s6700_s2 + $0x30c] ss:$16 sps:$4 sm:$0xff]  }
  0x82   :  { %1372 = vmatmul.mubr.bf16.vlgmr.msra.gmra.mxu0 %v5611_v20 }
  0x83   :  { %1463 = vmatpush1.bf16.msra.mxu0 %v4544_v21  ;;  %1494 = vmatprep.mubr.bf16.mxu0 %v5337_v52  ;;  %v4562_v52 = vld [vmem:[%s6700_s2 + $0x288] ss:$16 sps:$4 sm:$0xff]  }
  0x84   :  { %1450 = vmatpush2.bf16.msra.mxu1 %v4541_v18  ;;  %1464 = vmatprep.subr.bf16.mxu0 %v4552_v23  ;;  %v4631_v18 = vld [vmem:[%s6700_s2 + $0x548] ss:$16 sps:$4 sm:$0xff]   ;;  %v4642_v23 = vld [vmem:[%s6700_s2 + $0x60c] ss:$16 sps:$4 sm:$0xff]  }
  0x85   :  { %1451 = vmatprep.subr.bf16.mxu1 %v4549_v22  ;;  %v4634_v21 = vld [vmem:[%s6700_s2 + $0x308] ss:$16 sps:$4 sm:$0xff]   ;;  %v4639_v22 = vld [vmem:[%s6700_s2 + $0x52c] ss:$16 sps:$4 sm:$0xff]  }
  0x87   :  { %1465 = vmatpush1.bf16.msra.mxu0 %v4550_v25  ;;  %v4640_v25 = vld [vmem:[%s6700_s2 + $0x608] ss:$16 sps:$4 sm:$0xff]  }
  0x88   :  { %1452 = vmatpush2.bf16.msra.mxu1 %v4547_v24  ;;  %1466 = vmatprep.subr.bf16.mxu0 %v4558_v27  ;;  %v4637_v24 = vld [vmem:[%s6700_s2 + $0x528] ss:$16 sps:$4 sm:$0xff]   ;;  %v4648_v27 = vld [vmem:[%s6702_s4 + $0x74] ss:$8 sps:$4 sm:$0xff]  }
  0x89   :  { %1503 = vmatprep.subr.bf16.mxu1 %v4555_v26  ;;  %v4645_v26 = vld [vmem:[%s6700_s2 + $0x50c] ss:$16 sps:$4 sm:$0xff]  }
  0x8b   :  { %1454 = vmatmul.mubr.bf16.vlgmr.msra.gmra.mxu1 %v5398_v8  ;;  %1467 = vmatpush1.bf16.msra.mxu0 %v4556_v29  ;;  %v4568_v8 = vld [vmem:[%s6700_s2 + $0x268] ss:$16 sps:$4 sm:$0xff]  }
  0x8c   :  { %1504 = vmatpush1.bf16.msra.mxu1 %v4553_v28  ;;  %1468 = vmatprep.subr.bf16.mxu0 %v4564_v31  ;;  %v4643_v28 = vld [vmem:[%s6700_s2 + $0x508] ss:$16 sps:$4 sm:$0xff]   ;;  %v4654_v31 = vld [vmem:[%s6702_s4 + $0x54] ss:$8 sps:$4 sm:$0xff]  }
  0x8d   :  { %1505 = vmatprep.subr.bf16.mxu1 %v4561_v30  ;;  %1535 = vmatprep.mubr.bf16.mxu1 %v5482_v36  ;;  %v4571_v36 = vld [vmem:[%s6700_s2 + $0x488] ss:$16 sps:$4 sm:$0xff]   ;;  %v4651_v30 = vld [vmem:[%s6702_s4 + $0x64] ss:$8 sps:$4 sm:$0xff]  }
  0x8e   :  { %v4646_v29 = vld [vmem:[%s6702_s4 + $0x70] ss:$8 sps:$4 sm:$0xff]  }
  0x8f   :  { %1469 = vmatpush1.bf16.msra.mxu0 %v4562_v52  ;;  %v4657_v52 = vld [vmem:[%s6702_s4 + $0x44] ss:$8 sps:$4 sm:$0xff]  }
  0x90   :  { %1506 = vmatpush1.bf16.msra.mxu1 %v4559_v32  ;;  %1470 = vmatprep.subr.bf16.mxu0 %v4570_v34  ;;  %v4652_v32 = vld [vmem:[%s6702_s4 + $0x50] ss:$8 sps:$4 sm:$0xff]   ;;  %v4655_v34 = vld [vmem:[%s6702_s4 + $0x40] ss:$8 sps:$4 sm:$0xff]  }
  0x91   :  { %1507 = vmatprep.subr.bf16.mxu1 %v4567_v33  ;;  %v4699_v33 = vld [vmem:[%s6702_s4 + $0x164] ss:$8 sps:$4 sm:$0xff]  }
  0x93   :  { %1471 = vmatpush1.bf16.msra.mxu0 %v4568_v8  ;;  %v4697_v8 = vld [vmem:[%s6702_s4 + $0x160] ss:$8 sps:$4 sm:$0xff]  }
  0x94   :  { %1508 = vmatpush1.bf16.msra.mxu1 %v4565_v35  ;;  %1472 = vmatprep.subr.bf16.mxu0 %v4576_v38  ;;  %v4660_v35 = vld [vmem:[%s6702_s4 + $0x34] ss:$8 sps:$4 sm:$0xff]   ;;  %v4658_v38 = vld [vmem:[%s6702_s4 + $0x30] ss:$8 sps:$4 sm:$0xff]  }
  0x95   :  { %1509 = vmatprep.subr.bf16.mxu1 %v4573_v37  ;;  %v4702_v37 = vld [vmem:[%s6702_s4 + $0x154] ss:$8 sps:$4 sm:$0xff]  }
  0x97   :  { %1473 = vmatpush1.bf16.msra.mxu0 %v4574_v39  ;;  %v4663_v39 = vld [vmem:[%s6702_s4 + $0x24] ss:$8 sps:$4 sm:$0xff]  }
  0x98   :  { %1510 = vmatpush1.bf16.msra.mxu1 %v4571_v36  ;;  %1474 = vmatprep.subr.bf16.mxu0 %v4582_v41  ;;  %v4700_v36 = vld [vmem:[%s6702_s4 + $0x150] ss:$8 sps:$4 sm:$0xff]   ;;  %v4661_v41 = vld [vmem:[%s6702_s4 + $0x20] ss:$8 sps:$4 sm:$0xff]  }
  0x99   :  { %1511 = vmatprep.subr.bf16.mxu1 %v4579_v40  ;;  %v4705_v40 = vld [vmem:[%s6702_s4 + $0x144] ss:$8 sps:$4 sm:$0xff]  }
  0x9b   :  { %1475 = vmatpush1.bf16.msra.mxu0 %v4580_v43  ;;  %v4666_v43 = vld [vmem:[%s6702_s4 + $0x14] ss:$8 sps:$4 sm:$0xff]  }
  0x9c   :  { %1512 = vmatpush1.bf16.msra.mxu1 %v4577_v42  ;;  %1476 = vmatprep.subr.bf16.mxu0 %v4588_v45  ;;  %v4703_v42 = vld [vmem:[%s6702_s4 + $0x140] ss:$8 sps:$4 sm:$0xff]   ;;  %v4664_v45 = vld [vmem:[%s6702_s4 + $0x10] ss:$8 sps:$4 sm:$0xff]  }
  0x9d   :  { %1513 = vmatprep.subr.bf16.mxu1 %v4585_v44  ;;  %v4708_v44 = vld [vmem:[%s6702_s4 + $0x134] ss:$8 sps:$4 sm:$0xff]  }
  0x9f   :  { %1477 = vmatpush1.bf16.msra.mxu0 %v4586_v47  ;;  %v4669_v47 = vld [vmem:[%s6702_s4 + $0x4] ss:$8 sps:$4 sm:$0xff]  }
  0xa0   :  { %1514 = vmatpush1.bf16.msra.mxu1 %v4583_v46  ;;  %1478 = vmatprep.subr.bf16.mxu0 %v4594_v49  ;;  %v4706_v46 = vld [vmem:[%s6702_s4 + $0x130] ss:$8 sps:$4 sm:$0xff]   ;;  %v4672_v49 = vld [vmem:[%s6702_s4 + $0xf4] ss:$8 sps:$4 sm:$0xff]  }
  0xa1   :  { %1515 = vmatprep.subr.bf16.mxu1 %v4591_v48  ;;  %v4667_v48 = vld [vmem:[%s6702_s4] ss:$8 sps:$4 sm:$0xff]  }
  0xa3   :  { %1479 = vmatpush2.bf16.msra.mxu0 %v4592_v51  ;;  %v4675_v51 = vld [vmem:[%s6702_s4 + $0xe4] ss:$8 sps:$4 sm:$0xff]  }
  0xa4   :  { %1516 = vmatpush1.bf16.msra.mxu1 %v4589_v50  ;;  %1480 = vmatprep.subr.bf16.mxu0 %v4600_v54  ;;  %v4670_v50 = vld [vmem:[%s6702_s4 + $0xf0] ss:$8 sps:$4 sm:$0xff]   ;;  %v4678_v54 = vld [vmem:[%s6702_s4 + $0xd4] ss:$8 sps:$4 sm:$0xff]  }
  0xa5   :  { %1517 = vmatprep.subr.bf16.mxu1 %v4597_v53  ;;  %v4673_v53 = vld [vmem:[%s6702_s4 + $0xe0] ss:$8 sps:$4 sm:$0xff]  }
  0xa7   :  { %1481 = vmatpush2.bf16.msra.mxu0 %v4598_v56  ;;  %v4681_v56 = vld [vmem:[%s6702_s4 + $0xc4] ss:$8 sps:$4 sm:$0xff]  }
  0xa8   :  { %1518 = vmatpush1.bf16.msra.mxu1 %v4595_v55  ;;  %1482 = vmatprep.subr.bf16.mxu0 %v4606_v58  ;;  %v4676_v55 = vld [vmem:[%s6702_s4 + $0xd0] ss:$8 sps:$4 sm:$0xff]  }
  0xa9   :  { %1519 = vmatprep.subr.bf16.mxu1 %v4603_v57 }
  0xab   :  { %1483 = vmatpush2.bf16.msra.mxu0 %v4604_v60 }
  0xac   :  { %1520 = vmatpush2.bf16.msra.mxu1 %v4601_v59  ;;  %1484 = vmatprep.subr.bf16.mxu0 %v4612_v62 }
  0xad   :  { %1521 = vmatprep.subr.bf16.mxu1 %v4609_v61 }
  0xaf   :  { %1485 = vmatpush2.bf16.msra.mxu0 %v4610_v0 }
  0xb0   :  { %1522 = vmatpush2.bf16.msra.mxu1 %v4607_v63  ;;  %1486 = vmatprep.subr.bf16.mxu0 %v4618_v2 }
  0xb1   :  { %1523 = vmatprep.subr.bf16.mxu1 %v4615_v1 }
  0xb3   :  { %1487 = vmatpush2.bf16.msra.mxu0 %v4616_v4 }
  0xb4   :  { %1524 = vmatpush2.bf16.msra.mxu1 %v4613_v3  ;;  %1488 = vmatprep.subr.bf16.mxu0 %v4624_v6 }
  0xb5   :  { %1525 = vmatprep.subr.bf16.mxu1 %v4621_v5 }
  0xb7   :  { %1489 = vmatpush2.bf16.msra.mxu0 %v4622_v10 }
  0xb8   :  { %1526 = vmatpush2.bf16.msra.mxu1 %v4619_v7  ;;  %1490 = vmatprep.subr.bf16.mxu0 %v4630_v12 }
  0xb9   :  { %1527 = vmatprep.subr.bf16.mxu1 %v4627_v11 }
  0xbb   :  { %1491 = vmatpush2.bf16.msra.mxu0 %v4628_v14 }
  0xbc   :  { %1528 = vmatpush2.bf16.msra.mxu1 %v4625_v13  ;;  %1492 = vmatprep.subr.bf16.mxu0 %v4636_v17 }
  0xbd   :  { %1529 = vmatprep.subr.bf16.mxu1 %v4633_v15 }
  0xbf   :  { %1493 = vmatpush2.bf16.msra.mxu0 %v4634_v21 }
  0xc0   :  { %1530 = vmatpush2.bf16.msra.mxu1 %v4631_v18  ;;  %1558 = vmatprep.subr.bf16.mxu0 %v4642_v23 }
  0xc1   :  { %1531 = vmatprep.subr.bf16.mxu1 %v4639_v22 }
  0xc2   :  { %1495 = vmatmul.mubr.bf16.vlgmr.msra.gmra.mxu0 %v5400_v9  ;;  %v4649_v9 = vld [vmem:[%s6702_s4 + $0x60] ss:$8 sps:$4 sm:$0xff]  }
  0xc3   :  { %1559 = vmatpush1.bf16.msra.mxu0 %v4640_v25  ;;  %1576 = vmatprep.mubr.bf16.mxu0 %v5113_v16 }
  0xc4   :  { %1532 = vmatpush2.bf16.msra.mxu1 %v4637_v24  ;;  %1908 = vmatprep.subr.bf16.mxu0 %v4648_v27 }
  0xc5   :  { %1533 = vmatprep.subr.bf16.mxu1 %v4645_v26 }
  0xc8   :  { %1534 = vmatpush2.bf16.msra.mxu1 %v4643_v28 }
  0xca   :  { %4056 = vmatmul.mubr.msk.bf16.vlgmr.msra.gmra.mxu0 %vm1253_vm0, %v5429_v19  ;;  %v4694_v19 = vld [vmem:[%s6702_s4 + $0x170] ss:$8 sps:$4 sm:$0xff]  }
  0xcb   :  { %1536 = vmatmul.mubr.bf16.vlgmr.msra.gmra.mxu1 %v5611_v20  ;;  %1909 = vmatpush1.bf16.msra.mxu0 %v4646_v29  ;;  %v4696_v20 = vld [vmem:[%s6702_s4 + $0x174] ss:$8 sps:$4 sm:$0xff]  }
  0xcc   :  { %1910 = vmatprep.subr.bf16.mxu0 %v4651_v30  ;;  %1949 = vmatprep.subr.bf16.mxu1 %v4696_v20 }
  0xcd   :  { %1950 = vmatpush1.bf16.msra.mxu1 %v4694_v19 }
  0xce   :  { %1951 = vmatprep.subr.bf16.mxu1 %v4699_v33 }
  0xcf   :  { %1911 = vmatpush1.bf16.msra.mxu0 %v4649_v9 }
  0xd0   :  { %1912 = vmatprep.subr.bf16.mxu0 %v4654_v31 }
  0xd1   :  { %1952 = vmatpush1.bf16.msra.mxu1 %v4697_v8 }
  0xd2   :  { %1953 = vmatprep.subr.bf16.mxu1 %v4702_v37 }
  0xd3   :  { %1913 = vmatpush1.bf16.msra.mxu0 %v4652_v32 }
  0xd4   :  { %1914 = vmatprep.subr.bf16.mxu0 %v4657_v52 }
  0xd5   :  { %1954 = vmatpush1.bf16.msra.mxu1 %v4700_v36 }
  0xd6   :  { %1955 = vmatprep.subr.bf16.mxu1 %v4705_v40 }
  0xd7   :  { %1915 = vmatpush1.bf16.msra.mxu0 %v4655_v34 }
  0xd8   :  { %1916 = vmatprep.subr.bf16.mxu0 %v4660_v35 }
  0xd9   :  { %1956 = vmatpush1.bf16.msra.mxu1 %v4703_v42 }
  0xda   :  { %1957 = vmatprep.subr.bf16.mxu1 %v4708_v44 }
  0xdb   :  { %1917 = vmatpush1.bf16.msra.mxu0 %v4658_v38 }
  0xdc   :  { %1918 = vmatprep.subr.bf16.mxu0 %v4663_v39 }
  0xdd   :  { %1958 = vmatpush1.bf16.msra.mxu1 %v4706_v46 }
  0xdf   :  { %1919 = vmatpush1.bf16.msra.mxu0 %v4661_v41 }
  0xe0   :  { %1920 = vmatprep.subr.bf16.mxu0 %v4666_v43 }
  0xe3   :  { %1921 = vmatpush1.bf16.msra.mxu0 %v4664_v45 }
  0xe4   :  { %1922 = vmatprep.subr.bf16.mxu0 %v4669_v47 }
  0xe7   :  { %1923 = vmatpush1.bf16.msra.mxu0 %v4667_v48 }
  0xe8   :  { %1924 = vmatprep.subr.bf16.mxu0 %v4672_v49 }
  0xeb   :  { %1925 = vmatpush2.bf16.msra.mxu0 %v4670_v50 }
  0xec   :  { %1926 = vmatprep.subr.bf16.mxu0 %v4675_v51 }
  0xef   :  { %1927 = vmatpush2.bf16.msra.mxu0 %v4673_v53 }
  0xf0   :  { %1928 = vmatprep.subr.bf16.mxu0 %v4678_v54 }
  0xf1   :  { %19 = vsyncpa [#allocation5], 0  ;;  %v4679_v57 = vld [vmem:[%s6702_s4 + $0xc0] ss:$8 sps:$4 sm:$0xff]   ;;  %v4684_v58 = vld [vmem:[%s6702_s4 + $0xb4] ss:$8 sps:$4 sm:$0xff]   ;;  %v253_v27 = vlaneseq }
  0xf2   :  { %v4682_v59 = vld [vmem:[%s6702_s4 + $0xb0] ss:$8 sps:$4 sm:$0xff]   ;;  %v4687_v60 = vld [vmem:[%s6702_s4 + $0xa4] ss:$8 sps:$4 sm:$0xff]   ;;  %v4685_v61 = vld [vmem:[%s6702_s4 + $0xa0] ss:$8 sps:$4 sm:$0xff]  }
  0xf3   :  { %1929 = vmatpush2.bf16.msra.mxu0 %v4676_v55  ;;  %v4690_v62 = vld [vmem:[%s6702_s4 + $0x94] ss:$8 sps:$4 sm:$0xff]   ;;  %v4688_v63 = vld [vmem:[%s6702_s4 + $0x90] ss:$8 sps:$4 sm:$0xff]   ;;  %v4693_v0 = vld [vmem:[%s6702_s4 + $0x84] ss:$8 sps:$4 sm:$0xff]  }
  0xf4   :  { %1930 = vmatprep.subr.bf16.mxu0 %v4681_v56  ;;  %v4691_v3 = vld [vmem:[%s6702_s4 + $0x80] ss:$8 sps:$4 sm:$0xff]   ;;  %v4711_v6 = vld [vmem:[%s6702_s4 + $0x124] ss:$8 sps:$4 sm:$0xff]   ;;  %v4714_v14 = vld [vmem:[%s6702_s4 + $0x114] ss:$8 sps:$4 sm:$0xff]  }
  0xf5   :  { %v4709_v7 = vld [vmem:[%s6702_s4 + $0x120] ss:$8 sps:$4 sm:$0xff]   ;;  %1959 = vmatprep.subr.bf16.mxu1 %v4711_v6  ;;  %v4712_v15 = vld [vmem:[%s6702_s4 + $0x110] ss:$8 sps:$4 sm:$0xff]   ;;  %v4717_v21 = vld [vmem:[%s6702_s4 + $0x104] ss:$8 sps:$4 sm:$0xff]  }
  0xf6   :  { %1960 = vmatpush1.bf16.msra.mxu1 %v4709_v7  ;;  %v4715_v22 = vld [vmem:[%s6702_s4 + $0x100] ss:$8 sps:$4 sm:$0xff]   ;;  %v4720_v25 = vld [vmem:[%s6702_s4 + $0x184] ss:$8 sps:$4 sm:$0xff]   ;;  %v5973_v28 = vshrl.u32 %v253_v27, 7 }
  0xf7   :  { %1931 = vmatpush2.bf16.msra.mxu0 %v4679_v57  ;;  %1961 = vmatprep.subr.bf16.mxu1 %v4714_v14  ;;  %v4718_v26 = vld [vmem:[%s6702_s4 + $0x180] ss:$8 sps:$4 sm:$0xff]   ;;  %v4735_v27 = vld [vmem:[%s6704_s6 + $0xa4] ss:$16 sps:$4 sm:$0xff]  }
  0xf8   :  { %1932 = vmatprep.subr.bf16.mxu0 %v4684_v58  ;;  %v5976_v29 = vsub.s32 0, %v5973_v28  ;;  %v251_v30 = vld [vmem:[%s6701_s3] sm:$0xf]  ;;  %v5982_v9 = vsub.s32 1, %v5973_v28  ;;  %v5988_v49 = vsub.s32 2, %v5973_v28  ;;  %v5991_v50 = vsub.s32 3, %v5973_v28 }
  0xfa   :  { %1962 = vmatpush1.bf16.msra.mxu1 %v4712_v15  ;;  %v256_v31 = vrot.slane %v251_v30, %v5976_v29  ;;  %v260_v32 = vrot.slane %v251_v30, %v5982_v9  ;;  %v264_v53 = vrot.slane %v251_v30, %v5988_v49  ;;  %v268_v55 = vrot.slane %v251_v30, %v5991_v50  ;;  %v4738_v30 = vld [vmem:[%s6704_s6 + $0xac] ss:$16 sps:$4 sm:$0xff]  }
  0xfb   :  { %1933 = vmatpush2.bf16.msra.mxu0 %v4682_v59  ;;  %1963 = vmatprep.subr.bf16.mxu1 %v4717_v21  ;;  %v4724_v21 = vld [vmem:[%s6704_s6 + $0xe8] ss:$16 sps:$4 sm:$0xff]  }
  0xfc   :  { %1934 = vmatprep.subr.bf16.mxu0 %v4687_v60 }
  0xfe   :  { %1964 = vmatpush1.bf16.msra.mxu1 %v4715_v22  ;;  %v4726_v22 = vld [vmem:[%s6704_s6 + $0xec] ss:$16 sps:$4 sm:$0xff]  }
  0xff   :  { %1935 = vmatpush2.bf16.msra.mxu0 %v4685_v61  ;;  %1979 = vmatprep.subr.bf16.mxu1 %v4720_v25  ;;  %v4727_v25 = vld [vmem:[%s6704_s6 + $0xc0] ss:$16 sps:$4 sm:$0xff]  }
 0x100   :  { %1936 = vmatprep.subr.bf16.mxu0 %v4690_v62 }
 0x102   :  { %v1291_v1 = vpop.f32.mrf.mxu0  ;;  %1980 = vmatpush2.bf16.msra.mxu1 %v4718_v26  ;;  %v4730_v26 = vld [vmem:[%s6704_s6 + $0xc8] ss:$16 sps:$4 sm:$0xff]  }
 0x103   :  { %v1332_v2 = vpop.f32.mrf.mxu1  ;;  %1937 = vmatpush2.bf16.msra.mxu0 %v4688_v63  ;;  %v1292_v52 = vadd.f32 %v1291_v1, %v256_v31  ;;  %v4733_v31 = vld [vmem:[%s6704_s6 + $0xa0] ss:$16 sps:$4 sm:$0xff]  }
 0x104   :  { %v1293_v4 = vpop.f32.mrf.mxu0  ;;  %1938 = vmatprep.subr.bf16.mxu0 %v4693_v0 }
 0x105   :  { %v1334_v5 = vpop.f32.mrf.mxu1  ;;  %v1294_v19 = vadd.f32 %v1293_v4, %v260_v32  ;;  %v1333_v20 = vadd.f32 %v1332_v2, %v1292_v52  ;;  %v4736_v32 = vld [vmem:[%s6704_s6 + $0xa8] ss:$16 sps:$4 sm:$0xff]   ;;  %v4741_v52 = vld [vmem:[%s6704_s6 + $0x84] ss:$16 sps:$4 sm:$0xff]  }
 0x106   :  { %v1295_v10 = vpop.f32.mrf.mxu0 }
 0x107   :  { %v1336_v11 = vpop.f32.mrf.mxu1  ;;  %1939 = vmatpush2.bf16.msra.mxu0 %v4691_v3  ;;  %v1335_v34 = vadd.f32 %v1334_v5, %v1294_v19  ;;  %v4744_v19 = vld [vmem:[%s6704_s6 + $0x8c] ss:$16 sps:$4 sm:$0xff]  }
 0x108   :  { %v1296_v12 = vpop.f32.mrf.mxu0  ;;  %2252 = vmatprep.subr.bf16.mxu0 %v4726_v22  ;;  %v4799_v22 = vld [vmem:[%s6706_s8 + $0x4d0] ss:$28 sps:$4 sm:$0xff]  }
 0x109   :  { %v1337_v13 = vpop.f32.mrf.mxu1 }
 0x10b   :  { %v1414_v17 = vpop.f32.mrf.mxu1 }
 0x10d   :  { %v1416_v18 = vpop.f32.mrf.mxu1 }
 0x10f   :  { %v1418_v23 = vpop.f32.mrf.mxu1 }
 0x110   :  { %v4729_v23 = vld [vmem:[%s6704_s6 + $0xc4] ss:$16 sps:$4 sm:$0xff]  }
 0x111   :  { %v1419_v24 = vpop.f32.mrf.mxu1 }
 0x112   :  { %v4732_v24 = vld [vmem:[%s6704_s6 + $0xcc] ss:$16 sps:$4 sm:$0xff]  }
 0x142   :  { %v1373_v33 = vpop.f32.mrf.mxu0 }
 0x143   :  { %v1374_v35 = vadd.f32 %v1373_v33, %v1333_v20  ;;  %v4739_v20 = vld [vmem:[%s6704_s6 + $0x80] ss:$16 sps:$4 sm:$0xff]   ;;  %v4742_v33 = vld [vmem:[%s6704_s6 + $0x88] ss:$16 sps:$4 sm:$0xff]  }
 0x144   :  { %v1375_v8 = vpop.f32.mrf.mxu0 }
 0x145   :  { %v1415_v37 = vadd.f32 %v1414_v17, %v1374_v35  ;;  %v1376_v38 = vadd.f32 %v1375_v8, %v1335_v34  ;;  %v4721_v17 = vld [vmem:[%s6704_s6 + $0xe0] ss:$16 sps:$4 sm:$0xff]   ;;  %v4747_v34 = vld [vmem:[%s6704_s6 + $0x64] ss:$16 sps:$4 sm:$0xff]   ;;  %v4748_v8 = vld [vmem:[%s6704_s6 + $0x68] ss:$16 sps:$4 sm:$0xff]  }
 0x146   :  { %v1377_v36 = vpop.f32.mrf.mxu0  ;;  %v4745_v35 = vld [vmem:[%s6704_s6 + $0x60] ss:$16 sps:$4 sm:$0xff]  }
 0x147   :  { %v1417_v39 = vadd.f32 %v1416_v18, %v1376_v38  ;;  %v1585_v40 = vmax.f32 %v1415_v37, 0.0  ;;  %v4723_v18 = vld [vmem:[%s6704_s6 + $0xe4] ss:$16 sps:$4 sm:$0xff]   ;;  %v4750_v37 = vld [vmem:[%s6704_s6 + $0x6c] ss:$16 sps:$4 sm:$0xff]  }
 0x148   :  { %v1378_v41 = vpop.f32.mrf.mxu0  ;;  %2211 = vmatprep.subr.bf16.mxu1 %v4723_v18  ;;  %v4753_v38 = vld [vmem:[%s6704_s6 + $0x44] ss:$16 sps:$4 sm:$0xff]   ;;  %v4756_v36 = vld [vmem:[%s6704_s6 + $0x4c] ss:$16 sps:$4 sm:$0xff]  }
 0x149   :  { %v1586_v42 = vmax.f32 %v1417_v39, 0.0  ;;  %v1589_v45 = vpack.c.bf16 %v1585_v40, %v1585_v40  ;;  %v4751_v39 = vld [vmem:[%s6704_s6 + $0x40] ss:$16 sps:$4 sm:$0xff]   ;;  %v4754_v40 = vld [vmem:[%s6704_s6 + $0x48] ss:$16 sps:$4 sm:$0xff]  }
 0x14a   :  { %v4759_v41 = vld [vmem:[%s6704_s6 + $0x24] ss:$16 sps:$4 sm:$0xff]  }
 0x14b   :  { %v1455_v43 = vpop.f32.mrf.mxu1  ;;  %v1590_v44 = vpack.c.bf16 %v1586_v42, %v1586_v42  ;;  %v4762_v42 = vld [vmem:[%s6704_s6 + $0x2c] ss:$16 sps:$4 sm:$0xff]   ;;  %v4801_v18 = vld [vmem:[%s6706_s8 + $0x4d4] ss:$28 sps:$4 sm:$0xff]  }
 0x14c   :  { %v1456_v57 = vadd.f32 %v1455_v43, %v264_v53  ;;  %v4757_v43 = vld [vmem:[%s6704_s6 + $0x20] ss:$16 sps:$4 sm:$0xff]   ;;  %v4795_v53 = vld [vmem:[%s6706_s8 + $0x50c] ss:$28 sps:$4 sm:$0xff]  }
 0x14d   :  { %v1457_v46 = vpop.f32.mrf.mxu1  ;;  %1940 = vmatprep.mubr.bf16.mxu0 %v1590_v44  ;;  %v4760_v44 = vld [vmem:[%s6704_s6 + $0x28] ss:$16 sps:$4 sm:$0xff]  }
 0x14e   :  { %1941 = vmatmul.mubr.bf16.vlgmr.msra.gmra.mxu0 %v1589_v45  ;;  %v1458_v59 = vadd.f32 %v1457_v46, %v268_v55  ;;  %v4765_v45 = vld [vmem:[%s6704_s6 + $0x4] ss:$16 sps:$4 sm:$0xff]   ;;  %v4768_v46 = vld [vmem:[%s6704_s6 + $0xc] ss:$16 sps:$4 sm:$0xff]  }
 0x14f   :  { %v1459_v47 = vpop.f32.mrf.mxu1  ;;  %2284 = vmatprep.mubr.bf16.mxu0 %v5113_v16  ;;  %2253 = vmatpush1.bf16.msra.mxu0 %v4724_v21  ;;  %v4772_v21 = vld [vmem:[%s6706_s8 + $0x150] ss:$28 sps:$4 sm:$0xff]  }
 0x150   :  { %2254 = vmatprep.subr.bf16.mxu0 %v4732_v24  ;;  %v4763_v47 = vld [vmem:[%s6704_s6] ss:$16 sps:$4 sm:$0xff]   ;;  %v4807_v24 = vld [vmem:[%s6706_s8 + $0x49c] ss:$28 sps:$4 sm:$0xff]  }
 0x151   :  { %v1460_v48 = vpop.f32.mrf.mxu1 }
 0x152   :  { %v4766_v48 = vld [vmem:[%s6704_s6 + $0x8] ss:$16 sps:$4 sm:$0xff]  }
 0x153   :  { %2255 = vmatpush1.bf16.msra.mxu0 %v4730_v26  ;;  %v4805_v26 = vld [vmem:[%s6706_s8 + $0x498] ss:$28 sps:$4 sm:$0xff]  }
 0x154   :  { %2256 = vmatprep.subr.bf16.mxu0 %v4738_v30  ;;  %v4813_v30 = vld [vmem:[%s6706_s8 + $0x464] ss:$28 sps:$4 sm:$0xff]  }
 0x157   :  { %2257 = vmatpush1.bf16.msra.mxu0 %v4736_v32  ;;  %v4811_v32 = vld [vmem:[%s6706_s8 + $0x460] ss:$28 sps:$4 sm:$0xff]  }
 0x158   :  { %2258 = vmatprep.subr.bf16.mxu0 %v4744_v19  ;;  %v4819_v19 = vld [vmem:[%s6706_s8 + $0x42c] ss:$28 sps:$4 sm:$0xff]  }
 0x15b   :  { %2259 = vmatpush1.bf16.msra.mxu0 %v4742_v33  ;;  %v4817_v33 = vld [vmem:[%s6706_s8 + $0x428] ss:$28 sps:$4 sm:$0xff]  }
 0x15c   :  { %2260 = vmatprep.subr.bf16.mxu0 %v4750_v37  ;;  %v4823_v37 = vld [vmem:[%s6706_s8 + $0x3f0] ss:$28 sps:$4 sm:$0xff]  }
 0x15f   :  { %2261 = vmatpush1.bf16.msra.mxu0 %v4748_v8  ;;  %v4784_v8 = vld [vmem:[%s6706_s8 + $0x70] ss:$28 sps:$4 sm:$0xff]  }
 0x160   :  { %2262 = vmatprep.subr.bf16.mxu0 %v4756_v36  ;;  %v4831_v36 = vld [vmem:[%s6706_s8 + $0x3bc] ss:$28 sps:$4 sm:$0xff]  }
 0x163   :  { %2263 = vmatpush1.bf16.msra.mxu0 %v4754_v40  ;;  %v4829_v40 = vld [vmem:[%s6706_s8 + $0x3b8] ss:$28 sps:$4 sm:$0xff]  }
 0x164   :  { %2264 = vmatprep.subr.bf16.mxu0 %v4762_v42  ;;  %v4790_v42 = vld [vmem:[%s6706_s8] ss:$28 sps:$4 sm:$0xff]  }
 0x167   :  { %2265 = vmatpush1.bf16.msra.mxu0 %v4760_v44  ;;  %v4796_v44 = vld [vmem:[%s6706_s8 + $0x348] ss:$28 sps:$4 sm:$0xff]  }
 0x168   :  { %2266 = vmatprep.subr.bf16.mxu0 %v4768_v46  ;;  %v4802_v46 = vld [vmem:[%s6706_s8 + $0x310] ss:$28 sps:$4 sm:$0xff]  }
 0x16b   :  { %2267 = vmatpush1.bf16.msra.mxu0 %v4766_v48  ;;  %v4808_v48 = vld [vmem:[%s6706_s8 + $0x2d8] ss:$28 sps:$4 sm:$0xff]  }
 0x16c   :  { %3482 = vmatprep.subr.bf16.mxu0 %v4795_v53  ;;  %v4814_v53 = vld [vmem:[%s6706_s8 + $0x2a0] ss:$28 sps:$4 sm:$0xff]  }
 0x182   :  { %v1496_v51 = vpop.f32.mrf.mxu0 }
 0x183   :  { %v1497_v60 = vadd.f32 %v1496_v51, %v1456_v57  ;;  %v4771_v51 = vld [vmem:[%s6706_s8 + $0x18c] ss:$28 sps:$4 sm:$0xff]  }
 0x184   :  { %v1498_v54 = vpop.f32.mrf.mxu0 }
 0x185   :  { %v1499_v63 = vadd.f32 %v1498_v54, %v1458_v59 }
 0x186   :  { %v1500_v56 = vpop.f32.mrf.mxu0 }
 0x188   :  { %v1501_v58 = vpop.f32.mrf.mxu0 }
 0x189   :  { %v1643_v58 = vld [vmem:[%s6703_s5] sm:$0x3] }
 0x18a   :  { %v1578_v62 = vpop.f32.mrf.mxu0  ;;  %v1648_v59 = vrot.slane %v1643_v58, %v5976_v29 }
 0x18b   :  { %v1537_v61 = vpop.f32.mrf.mxu1 }
 0x18c   :  { %v1538_v0 = vadd.f32 %v1537_v61, %v1497_v60  ;;  %v1580_v2 = vpop.f32.mrf.mxu0  ;;  %v1652_v60 = vrot.slane %v1643_v58, %v5982_v9  ;;  %v4834_v58 = vld [vmem:[%s6706_s8 + $0x1fc] ss:$28 sps:$4 sm:$0xff]  }
 0x18d   :  { %v1539_v1 = vpop.f32.mrf.mxu1 }
 0x18e   :  { %v1579_v3 = vadd.f32 %v1578_v62, %v1538_v0  ;;  %v1540_v4 = vadd.f32 %v1539_v1, %v1499_v63  ;;  %v1582_v6 = vpop.f32.mrf.mxu0 }
 0x18f   :  { %v1541_v5 = vpop.f32.mrf.mxu1 }
 0x190   :  { %v1581_v7 = vadd.f32 %v1580_v2, %v1540_v4  ;;  %v1587_v10 = vmax.f32 %v1579_v3, 0.0  ;;  %v1583_v12 = vpop.f32.mrf.mxu0 }
 0x191   :  { %v1542_v11 = vpop.f32.mrf.mxu1 }
 0x192   :  { %v1588_v13 = vmax.f32 %v1581_v7, 0.0  ;;  %v1591_v15 = vpack.c.bf16 %v1587_v10, %v1587_v10  ;;  %v1993_v7 = vld [vmem:[%s6699_s1] sm:$0xff] }
 0x194   :  { %v1592_v14 = vpack.c.bf16 %v1588_v13, %v1588_v13  ;;  %v4769_v13 = vld [vmem:[%s6706_s8 + $0x188] ss:$28 sps:$4 sm:$0xff]  }
 0x196   :  { %4107 = vmatprep.mubr.msk.bf16.mxu1 %vm1253_vm0, %v1592_v14  ;;  %v4793_v14 = vld [vmem:[%s6706_s8 + $0x508] ss:$28 sps:$4 sm:$0xff]  }
 0x197   :  { %1982 = vmatmul.mubr.bf16.vlgmr.msra.gmra.mxu1 %v1591_v15 }
 0x198   :  { %2212 = vmatpush1.bf16.msra.mxu1 %v4721_v17  ;;  %2243 = vmatprep.mubr.bf16.mxu1 %v5113_v16  ;;  %v4774_v17 = vld [vmem:[%s6706_s8 + $0x154] ss:$28 sps:$4 sm:$0xff]  }
 0x199   :  { %2213 = vmatprep.subr.bf16.mxu1 %v4729_v23  ;;  %v4777_v23 = vld [vmem:[%s6706_s8 + $0x11c] ss:$28 sps:$4 sm:$0xff]  }
 0x19c   :  { %2214 = vmatpush1.bf16.msra.mxu1 %v4727_v25  ;;  %v4775_v25 = vld [vmem:[%s6706_s8 + $0x118] ss:$28 sps:$4 sm:$0xff]  }
 0x19d   :  { %2215 = vmatprep.subr.bf16.mxu1 %v4735_v27  ;;  %v4780_v27 = vld [vmem:[%s6706_s8 + $0xe4] ss:$28 sps:$4 sm:$0xff]  }
 0x1a0   :  { %2216 = vmatpush1.bf16.msra.mxu1 %v4733_v31  ;;  %v4778_v31 = vld [vmem:[%s6706_s8 + $0xe0] ss:$28 sps:$4 sm:$0xff]  }
 0x1a1   :  { %2217 = vmatprep.subr.bf16.mxu1 %v4741_v52  ;;  %v4783_v52 = vld [vmem:[%s6706_s8 + $0xac] ss:$28 sps:$4 sm:$0xff]  }
 0x1a4   :  { %2218 = vmatpush1.bf16.msra.mxu1 %v4739_v20  ;;  %v4781_v20 = vld [vmem:[%s6706_s8 + $0xa8] ss:$28 sps:$4 sm:$0xff]  }
 0x1a5   :  { %2219 = vmatprep.subr.bf16.mxu1 %v4747_v34  ;;  %v4786_v34 = vld [vmem:[%s6706_s8 + $0x74] ss:$28 sps:$4 sm:$0xff]  }
 0x1a8   :  { %2220 = vmatpush1.bf16.msra.mxu1 %v4745_v35  ;;  %v4825_v35 = vld [vmem:[%s6706_s8 + $0x3f4] ss:$28 sps:$4 sm:$0xff]  }
 0x1a9   :  { %2221 = vmatprep.subr.bf16.mxu1 %v4753_v38  ;;  %v4789_v38 = vld [vmem:[%s6706_s8 + $0x3c] ss:$28 sps:$4 sm:$0xff]  }
 0x1ac   :  { %2222 = vmatpush1.bf16.msra.mxu1 %v4751_v39  ;;  %v4787_v39 = vld [vmem:[%s6706_s8 + $0x38] ss:$28 sps:$4 sm:$0xff]  }
 0x1ad   :  { %2223 = vmatprep.subr.bf16.mxu1 %v4759_v41  ;;  %v4792_v41 = vld [vmem:[%s6706_s8 + $0x4] ss:$28 sps:$4 sm:$0xff]  }
 0x1b0   :  { %2224 = vmatpush1.bf16.msra.mxu1 %v4757_v43  ;;  %v4798_v43 = vld [vmem:[%s6706_s8 + $0x34c] ss:$28 sps:$4 sm:$0xff]  }
 0x1b1   :  { %2225 = vmatprep.subr.bf16.mxu1 %v4765_v45  ;;  %v4804_v45 = vld [vmem:[%s6706_s8 + $0x314] ss:$28 sps:$4 sm:$0xff]  }
 0x1b4   :  { %2226 = vmatpush1.bf16.msra.mxu1 %v4763_v47  ;;  %v4810_v47 = vld [vmem:[%s6706_s8 + $0x2dc] ss:$28 sps:$4 sm:$0xff]  }
 0x1b5   :  { %3441 = vmatprep.subr.bf16.mxu1 %v4771_v51  ;;  %v4816_v51 = vld [vmem:[%s6706_s8 + $0x2a4] ss:$28 sps:$4 sm:$0xff]  }
 0x20e   :  { %v1942_v54 = vpop.f32.mrf.mxu0 }
 0x20f   :  { %v1943_v61 = vadd.f32 %v1942_v54, %v1648_v59  ;;  %v4822_v54 = vld [vmem:[%s6706_s8 + $0x26c] ss:$28 sps:$4 sm:$0xff]   ;;  %v4837_v59 = vld [vmem:[%s6706_s8 + $0x384] ss:$28 sps:$4 sm:$0xff]  }
 0x210   :  { %v1944_v55 = vpop.f32.mrf.mxu0 }
 0x211   :  { %v1945_v63 = vadd.f32 %v1944_v55, %v1652_v60  ;;  %v4820_v55 = vld [vmem:[%s6706_s8 + $0x268] ss:$28 sps:$4 sm:$0xff]   ;;  %v4832_v60 = vld [vmem:[%s6706_s8 + $0x1f8] ss:$28 sps:$4 sm:$0xff]  }
 0x212   :  { %v1946_v56 = vpop.f32.mrf.mxu0 }
 0x213   :  { %v4828_v56 = vld [vmem:[%s6706_s8 + $0x234] ss:$28 sps:$4 sm:$0xff]  }
 0x214   :  { %v1947_v57 = vpop.f32.mrf.mxu0 }
 0x215   :  { %v4826_v57 = vld [vmem:[%s6706_s8 + $0x230] ss:$28 sps:$4 sm:$0xff]  }
 0x257   :  { %v1983_v62 = vpop.f32.mrf.mxu1 }
 0x258   :  { %v1984_v0 = vadd.f32 %v1983_v62, %v1943_v61  ;;  %v4835_v61 = vld [vmem:[%s6706_s8 + $0x380] ss:$28 sps:$4 sm:$0xff]  }
 0x259   :  { %v1985_v1 = vpop.f32.mrf.mxu1  ;;  %v4840_v62 = vld [vmem:[%s6706_s8 + $0x1c4] ss:$28 sps:$4 sm:$0xff]  }
 0x25a   :  { %3816 = vst [vmem:[#allocation4] sm:$0xff] %v1984_v0  ;;  %v1986_v2 = vadd.f32 %v1985_v1, %v1945_v63  ;;  %v4843_v63 = vld [vmem:[%s6706_s8 + $0x544] ss:$28 sps:$4 sm:$0xff]  }
 0x25b   :  { %v1987_v3 = vpop.f32.mrf.mxu1  ;;  %v4841_v1 = vld [vmem:[%s6706_s8 + $0x540] ss:$28 sps:$4 sm:$0xff]  }
 0x25c   :  { %v1990_v4 = vmul.f32 0.5, %v1986_v2  ;;  %3817 = vst [vmem:[#allocation6] sm:$0xff] %v1986_v2  ;;  %v4846_v2 = vld [vmem:[%s6706_s8 + $0x194] ss:$28 sps:$4 sm:$0xff]  }
 0x25d   :  { %v1988_v5 = vpop.f32.mrf.mxu1  ;;  %v4849_v3 = vld [vmem:[%s6706_s8 + $0x514] ss:$28 sps:$4 sm:$0xff]  }
 0x25e   :  { %v1991_v6 = vmul.f32 1.442695, %v1990_v4  ;;  %v2029_v4 = vld [vmem:[%s6705_s7] sm:$0xf] }
 0x25f   :  { %v2034_v5 = vrot.slane %v2029_v4, %v5976_v29 }
 0x260   :  { %5019 = vpow2.f32 %v1991_v6  ;;  %v2042_v6 = vrot.slane %v2029_v4, %v5988_v49 }
 0x26d   :  { %v5020_v10 = vpop.eup %5019 }
 0x26e   :  { %v1994_v11 = vmul.f32 %v5020_v10, %v1993_v7  ;;  %v2038_v7 = vrot.slane %v2029_v4, %v5982_v9  ;;  %v2046_v10 = vrot.slane %v2029_v4, %v5991_v50  ;;  %v4895_v4 = vld [vmem:[%s6706_s8 + $0x548] ss:$28 sps:$4 sm:$0xff]  }
 0x270   :  { %v1995_v12 = vadd.f32 %v1994_v11, %v1984_v0  ;;  %v4838_v0 = vld [vmem:[%s6706_s8 + $0x1c0] ss:$28 sps:$4 sm:$0xff]  }
 0x272   :  { %v1996_v15 = vpack.c.bf16 %v1995_v12, %v1995_v12 }
 0x274   :  { %2244 = vmatmul.mubr.bf16.vlgmr.msra.gmra.mxu1 %v1996_v15  ;;  %2285 = vmatmul.mubr.bf16.vlgmr.msra.gmra.mxu0 %v1996_v15 }
 0x275   :  { %3442 = vmatpush1.bf16.msra.mxu1 %v4769_v13  ;;  %3483 = vmatpush1.bf16.msra.mxu0 %v4793_v14 }
 0x276   :  { %3443 = vmatprep.subr.bf16.mxu1 %v4774_v17  ;;  %3484 = vmatprep.subr.bf16.mxu0 %v4801_v18 }
 0x279   :  { %3444 = vmatpush1.bf16.msra.mxu1 %v4772_v21  ;;  %3485 = vmatpush1.bf16.msra.mxu0 %v4799_v22 }
 0x27a   :  { %3445 = vmatprep.subr.bf16.mxu1 %v4777_v23  ;;  %3486 = vmatprep.subr.bf16.mxu0 %v4807_v24 }
 0x27d   :  { %3446 = vmatpush1.bf16.msra.mxu1 %v4775_v25  ;;  %3487 = vmatpush1.bf16.msra.mxu0 %v4805_v26 }
 0x27e   :  { %3447 = vmatprep.subr.bf16.mxu1 %v4780_v27  ;;  %3488 = vmatprep.subr.bf16.mxu0 %v4813_v30 }
 0x281   :  { %3448 = vmatpush1.bf16.msra.mxu1 %v4778_v31  ;;  %3489 = vmatpush1.bf16.msra.mxu0 %v4811_v32 }
 0x282   :  { %3449 = vmatprep.subr.bf16.mxu1 %v4783_v52  ;;  %3490 = vmatprep.subr.bf16.mxu0 %v4819_v19  ;;  %v4844_v19 = vld [vmem:[%s6706_s8 + $0x190] ss:$28 sps:$4 sm:$0xff]  }
 0x285   :  { %3450 = vmatpush1.bf16.msra.mxu1 %v4781_v20  ;;  %3491 = vmatpush1.bf16.msra.mxu0 %v4817_v33  ;;  %v4847_v20 = vld [vmem:[%s6706_s8 + $0x510] ss:$28 sps:$4 sm:$0xff]  }
 0x286   :  { %3451 = vmatprep.subr.bf16.mxu1 %v4786_v34  ;;  %3492 = vmatprep.subr.bf16.mxu0 %v4825_v35  ;;  %v4852_v35 = vld [vmem:[%s6706_s8 + $0x15c] ss:$28 sps:$4 sm:$0xff]  }
 0x289   :  { %3452 = vmatpush1.bf16.msra.mxu1 %v4784_v8  ;;  %3493 = vmatpush1.bf16.msra.mxu0 %v4823_v37  ;;  %v4855_v8 = vld [vmem:[%s6706_s8 + $0x4dc] ss:$28 sps:$4 sm:$0xff]  }
 0x28a   :  { %3453 = vmatprep.subr.bf16.mxu1 %v4789_v38  ;;  %3494 = vmatprep.subr.bf16.mxu0 %v4831_v36  ;;  %v4850_v37 = vld [vmem:[%s6706_s8 + $0x158] ss:$28 sps:$4 sm:$0xff]   ;;  %v4858_v36 = vld [vmem:[%s6706_s8 + $0x124] ss:$28 sps:$4 sm:$0xff]  }
 0x28b   :  { %v4853_v38 = vld [vmem:[%s6706_s8 + $0x4d8] ss:$28 sps:$4 sm:$0xff]  }
 0x28d   :  { %3454 = vmatpush1.bf16.msra.mxu1 %v4787_v39  ;;  %3495 = vmatpush1.bf16.msra.mxu0 %v4829_v40  ;;  %v4861_v39 = vld [vmem:[%s6706_s8 + $0x4a4] ss:$28 sps:$4 sm:$0xff]  }
 0x28e   :  { %3455 = vmatprep.subr.bf16.mxu1 %v4792_v41  ;;  %3496 = vmatprep.subr.bf16.mxu0 %v4837_v59  ;;  %v4856_v40 = vld [vmem:[%s6706_s8 + $0x120] ss:$28 sps:$4 sm:$0xff]  }
 0x28f   :  { %v4859_v41 = vld [vmem:[%s6706_s8 + $0x4a0] ss:$28 sps:$4 sm:$0xff]  }
 0x290   :  { %v4880_v59 = vld [vmem:[%s6706_s8 + $0x40] ss:$28 sps:$4 sm:$0xff]  }
 0x291   :  { %3456 = vmatpush1.bf16.msra.mxu1 %v4790_v42  ;;  %3497 = vmatpush1.bf16.msra.mxu0 %v4835_v61  ;;  %v4864_v42 = vld [vmem:[%s6706_s8 + $0xec] ss:$28 sps:$4 sm:$0xff]  }
 0x292   :  { %3457 = vmatprep.subr.bf16.mxu1 %v4798_v43  ;;  %3512 = vmatprep.subr.bf16.mxu0 %v4843_v63  ;;  %v4867_v43 = vld [vmem:[%s6706_s8 + $0x46c] ss:$28 sps:$4 sm:$0xff]  }
 0x293   :  { %v4888_v61 = vld [vmem:[%s6706_s8 + $0xc] ss:$28 sps:$4 sm:$0xff]  }
 0x294   :  { %v4886_v63 = vld [vmem:[%s6706_s8 + $0x8] ss:$28 sps:$4 sm:$0xff]  }
 0x295   :  { %3458 = vmatpush2.bf16.msra.mxu1 %v4796_v44  ;;  %3513 = vmatpush2.bf16.msra.mxu0 %v4841_v1  ;;  %v4862_v44 = vld [vmem:[%s6706_s8 + $0xe8] ss:$28 sps:$4 sm:$0xff]   ;;  %v4894_v1 = vld [vmem:[%s6706_s8 + $0x354] ss:$28 sps:$4 sm:$0xff]  }
 0x296   :  { %3459 = vmatprep.subr.bf16.mxu1 %v4804_v45  ;;  %3523 = vmatprep.subr.bf16.mxu0 %v4846_v2  ;;  %v4865_v45 = vld [vmem:[%s6706_s8 + $0x468] ss:$28 sps:$4 sm:$0xff]  }
 0x297   :  { %v4897_v2 = vld [vmem:[%s6706_s8 + $0x54c] ss:$28 sps:$4 sm:$0xff]  }
 0x299   :  { %3460 = vmatpush2.bf16.msra.mxu1 %v4802_v46  ;;  %v4870_v46 = vld [vmem:[%s6706_s8 + $0xb4] ss:$28 sps:$4 sm:$0xff]  }
 0x29a   :  { %3461 = vmatprep.subr.bf16.mxu1 %v4810_v47  ;;  %v4873_v47 = vld [vmem:[%s6706_s8 + $0x434] ss:$28 sps:$4 sm:$0xff]  }
 0x29d   :  { %3462 = vmatpush2.bf16.msra.mxu1 %v4808_v48  ;;  %v4868_v48 = vld [vmem:[%s6706_s8 + $0xb0] ss:$28 sps:$4 sm:$0xff]  }
 0x29e   :  { %3463 = vmatprep.subr.bf16.mxu1 %v4816_v51  ;;  %v4871_v51 = vld [vmem:[%s6706_s8 + $0x430] ss:$28 sps:$4 sm:$0xff]  }
 0x2a1   :  { %3464 = vmatpush2.bf16.msra.mxu1 %v4814_v53  ;;  %v4876_v53 = vld [vmem:[%s6706_s8 + $0x7c] ss:$28 sps:$4 sm:$0xff]  }
 0x2a2   :  { %3465 = vmatprep.subr.bf16.mxu1 %v4822_v54  ;;  %v4879_v54 = vld [vmem:[%s6706_s8 + $0x3fc] ss:$28 sps:$4 sm:$0xff]  }
 0x2a5   :  { %3466 = vmatpush2.bf16.msra.mxu1 %v4820_v55  ;;  %v4874_v55 = vld [vmem:[%s6706_s8 + $0x78] ss:$28 sps:$4 sm:$0xff]  }
 0x2a6   :  { %3467 = vmatprep.subr.bf16.mxu1 %v4828_v56  ;;  %v4877_v56 = vld [vmem:[%s6706_s8 + $0x3f8] ss:$28 sps:$4 sm:$0xff]  }
 0x2a9   :  { %3468 = vmatpush2.bf16.msra.mxu1 %v4826_v57  ;;  %v4882_v57 = vld [vmem:[%s6706_s8 + $0x44] ss:$28 sps:$4 sm:$0xff]  }
 0x2aa   :  { %3469 = vmatprep.subr.bf16.mxu1 %v4834_v58  ;;  %v4885_v58 = vld [vmem:[%s6706_s8 + $0x3c4] ss:$28 sps:$4 sm:$0xff]  }
 0x2ad   :  { %3470 = vmatpush2.bf16.msra.mxu1 %v4832_v60  ;;  %v4883_v60 = vld [vmem:[%s6706_s8 + $0x3c0] ss:$28 sps:$4 sm:$0xff]  }
 0x2ae   :  { %3471 = vmatprep.subr.bf16.mxu1 %v4840_v62  ;;  %v4891_v62 = vld [vmem:[%s6706_s8 + $0x38c] ss:$28 sps:$4 sm:$0xff]  }
 0x2b1   :  { %3472 = vmatpush2.bf16.msra.mxu1 %v4838_v0  ;;  %v4889_v0 = vld [vmem:[%s6706_s8 + $0x388] ss:$28 sps:$4 sm:$0xff]  }
 0x2b2   :  { %3564 = vmatprep.subr.bf16.mxu1 %v4849_v3  ;;  %v4892_v3 = vld [vmem:[%s6706_s8 + $0x350] ss:$28 sps:$4 sm:$0xff]  }
 0x334   :  { %v2245_v11 = vpop.f32.mrf.mxu1  ;;  %v2286_v12 = vpop.f32.mrf.mxu0 }
 0x335   :  { %v2246_v13 = vadd.f32 %v2245_v11, %v2034_v5  ;;  %v2287_v14 = vadd.f32 %v2286_v12, %v2042_v6  ;;  %v4900_v5 = vld [vmem:[%s6706_s8 + $0x31c] ss:$28 sps:$4 sm:$0xff]   ;;  %v4906_v11 = vld [vmem:[%s6706_s8 + $0x2e4] ss:$28 sps:$4 sm:$0xff]  }
 0x336   :  { %v2247_v15 = vpop.f32.mrf.mxu1  ;;  %v2288_v17 = vpop.f32.mrf.mxu0  ;;  %v4903_v6 = vld [vmem:[%s6706_s8 + $0x19c] ss:$28 sps:$4 sm:$0xff]   ;;  %v4909_v12 = vld [vmem:[%s6706_s8 + $0x164] ss:$28 sps:$4 sm:$0xff]  }
 0x337   :  { %v2248_v18 = vadd.f32 %v2247_v15, %v2038_v7  ;;  %v2289_v21 = vadd.f32 %v2288_v17, %v2046_v10  ;;  %v2293_v22 = vmax.f32 %v2246_v13, 0.0  ;;  %v2295_v23 = vmax.f32 %v2287_v14, 0.0  ;;  %v4898_v7 = vld [vmem:[%s6706_s8 + $0x318] ss:$28 sps:$4 sm:$0xff]   ;;  %v4904_v13 = vld [vmem:[%s6706_s8 + $0x2e0] ss:$28 sps:$4 sm:$0xff]  }
 0x338   :  { %v2249_v24 = vpop.f32.mrf.mxu1  ;;  %v2290_v25 = vpop.f32.mrf.mxu0  ;;  %v4901_v10 = vld [vmem:[%s6706_s8 + $0x198] ss:$28 sps:$4 sm:$0xff]   ;;  %v4907_v14 = vld [vmem:[%s6706_s8 + $0x160] ss:$28 sps:$4 sm:$0xff]   ;;  %v4912_v15 = vld [vmem:[%s6706_s8 + $0x2ac] ss:$28 sps:$4 sm:$0xff]  }
 0x339   :  { %v2294_v26 = vmax.f32 %v2248_v18, 0.0  ;;  %v2296_v27 = vmax.f32 %v2289_v21, 0.0  ;;  %v6274_v33 = vpack.c.bf16 %v2293_v22, %v2293_v22  ;;  %v6276_v34 = vpack.c.bf16 %v2295_v23, %v2295_v23  ;;  %v4915_v17 = vld [vmem:[%s6706_s8 + $0x12c] ss:$28 sps:$4 sm:$0xff]   ;;  %v4918_v22 = vld [vmem:[%s6706_s8 + $0x274] ss:$28 sps:$4 sm:$0xff]  }
 0x33a   :  { %v2250_v30 = vpop.f32.mrf.mxu1  ;;  %v2291_v31 = vpop.f32.mrf.mxu0  ;;  %v4910_v18 = vld [vmem:[%s6706_s8 + $0x2a8] ss:$28 sps:$4 sm:$0xff]   ;;  %v4921_v23 = vld [vmem:[%s6706_s8 + $0xf4] ss:$28 sps:$4 sm:$0xff]  }
 0x33b   :  { %v6264_v32 = vpack.c.bf16 %v2294_v26, %v2294_v26  ;;  %v6266_v52 = vpack.c.bf16 %v2296_v27, %v2296_v27  ;;  %v4913_v21 = vld [vmem:[%s6706_s8 + $0x128] ss:$28 sps:$4 sm:$0xff]   ;;  %v4916_v24 = vld [vmem:[%s6706_s8 + $0x270] ss:$28 sps:$4 sm:$0xff]   ;;  %v4924_v26 = vld [vmem:[%s6706_s8 + $0x23c] ss:$28 sps:$4 sm:$0xff]  }
 0x33c   :  { %v4919_v25 = vld [vmem:[%s6706_s8 + $0xf0] ss:$28 sps:$4 sm:$0xff]   ;;  %v4927_v27 = vld [vmem:[%s6706_s8 + $0xbc] ss:$28 sps:$4 sm:$0xff]  }
 0x33d   :  { %3473 = vmatprep.mubr.bf16.mxu1 %v6264_v32  ;;  %4315 = vmatprep.mubr.msk.bf16.mxu0 %vm1253_vm0, %v6266_v52  ;;  %v4922_v30 = vld [vmem:[%s6706_s8 + $0x238] ss:$28 sps:$4 sm:$0xff]  }
 0x33e   :  { %3474 = vmatmul.mubr.bf16.vlgmr.msra.gmra.mxu1 %v6274_v33  ;;  %3515 = vmatmul.mubr.bf16.vlgmr.msra.gmra.mxu0 %v6276_v34  ;;  %v4925_v31 = vld [vmem:[%s6706_s8 + $0xb8] ss:$28 sps:$4 sm:$0xff]  }
 0x33f   :  { %3524 = vmatpush1.bf16.msra.mxu0 %v4844_v19  ;;  %3565 = vmatpush1.bf16.msra.mxu1 %v4847_v20  ;;  %v4930_v19 = vld [vmem:[%s6706_s8 + $0x204] ss:$28 sps:$4 sm:$0xff]  }
 0x340   :  { %3555 = vmatprep.mubr.bf16.mxu0 %v6264_v32  ;;  %4316 = vmatprep.mubr.msk.bf16.mxu1 %vm1253_vm0, %v6266_v52  ;;  %v4933_v20 = vld [vmem:[%s6706_s8 + $0x84] ss:$28 sps:$4 sm:$0xff]  }
 0x341   :  { %3525 = vmatprep.subr.bf16.mxu0 %v4852_v35  ;;  %3566 = vmatprep.subr.bf16.mxu1 %v4855_v8  ;;  %v4928_v35 = vld [vmem:[%s6706_s8 + $0x200] ss:$28 sps:$4 sm:$0xff]  }
 0x342   :  { %v4931_v8 = vld [vmem:[%s6706_s8 + $0x80] ss:$28 sps:$4 sm:$0xff]  }
 0x343   :  { %3526 = vmatpush1.bf16.msra.mxu0 %v4850_v37  ;;  %3567 = vmatpush1.bf16.msra.mxu1 %v4853_v38  ;;  %v4936_v37 = vld [vmem:[%s6706_s8 + $0x1cc] ss:$28 sps:$4 sm:$0xff]  }
 0x344   :  { %3527 = vmatprep.subr.bf16.mxu0 %v4858_v36  ;;  %3568 = vmatprep.subr.bf16.mxu1 %v4861_v39  ;;  %v4939_v38 = vld [vmem:[%s6706_s8 + $0x4c] ss:$28 sps:$4 sm:$0xff]  }
 0x345   :  { %v4934_v36 = vld [vmem:[%s6706_s8 + $0x1c8] ss:$28 sps:$4 sm:$0xff]  }
 0x346   :  { %v4937_v39 = vld [vmem:[%s6706_s8 + $0x48] ss:$28 sps:$4 sm:$0xff]  }
 0x347   :  { %3528 = vmatpush1.bf16.msra.mxu0 %v4856_v40  ;;  %3569 = vmatpush1.bf16.msra.mxu1 %v4859_v41  ;;  %v4942_v40 = vld [vmem:[%s6706_s8 + $0x14] ss:$28 sps:$4 sm:$0xff]   ;;  %v4945_v41 = vld [vmem:[%s6706_s8 + $0x51c] ss:$28 sps:$4 sm:$0xff]  }
 0x348   :  { %3529 = vmatprep.subr.bf16.mxu0 %v4864_v42  ;;  %3570 = vmatprep.subr.bf16.mxu1 %v4867_v43  ;;  %v4940_v42 = vld [vmem:[%s6706_s8 + $0x10] ss:$28 sps:$4 sm:$0xff]   ;;  %v4943_v43 = vld [vmem:[%s6706_s8 + $0x518] ss:$28 sps:$4 sm:$0xff]  }
 0x34b   :  { %3530 = vmatpush1.bf16.msra.mxu0 %v4862_v44  ;;  %3571 = vmatpush1.bf16.msra.mxu1 %v4865_v45  ;;  %v4948_v44 = vld [vmem:[%s6706_s8 + $0x35c] ss:$28 sps:$4 sm:$0xff]   ;;  %v4951_v45 = vld [vmem:[%s6706_s8 + $0x4e4] ss:$28 sps:$4 sm:$0xff]  }
 0x34c   :  { %3531 = vmatprep.subr.bf16.mxu0 %v4870_v46  ;;  %3572 = vmatprep.subr.bf16.mxu1 %v4873_v47  ;;  %v4946_v46 = vld [vmem:[%s6706_s8 + $0x358] ss:$28 sps:$4 sm:$0xff]   ;;  %v4949_v47 = vld [vmem:[%s6706_s8 + $0x4e0] ss:$28 sps:$4 sm:$0xff]  }
 0x34f   :  { %3532 = vmatpush1.bf16.msra.mxu0 %v4868_v48  ;;  %3573 = vmatpush1.bf16.msra.mxu1 %v4871_v51  ;;  %v4954_v48 = vld [vmem:[%s6706_s8 + $0x324] ss:$28 sps:$4 sm:$0xff]   ;;  %v4957_v51 = vld [vmem:[%s6706_s8 + $0x4ac] ss:$28 sps:$4 sm:$0xff]  }
 0x350   :  { %3533 = vmatprep.subr.bf16.mxu0 %v4876_v53  ;;  %3574 = vmatprep.subr.bf16.mxu1 %v4879_v54  ;;  %v4952_v53 = vld [vmem:[%s6706_s8 + $0x320] ss:$28 sps:$4 sm:$0xff]   ;;  %v4955_v54 = vld [vmem:[%s6706_s8 + $0x4a8] ss:$28 sps:$4 sm:$0xff]  }
 0x353   :  { %3534 = vmatpush1.bf16.msra.mxu0 %v4874_v55  ;;  %3575 = vmatpush1.bf16.msra.mxu1 %v4877_v56  ;;  %v4960_v55 = vld [vmem:[%s6706_s8 + $0x2ec] ss:$28 sps:$4 sm:$0xff]   ;;  %v4963_v56 = vld [vmem:[%s6706_s8 + $0x474] ss:$28 sps:$4 sm:$0xff]  }
 0x354   :  { %3535 = vmatprep.subr.bf16.mxu0 %v4882_v57  ;;  %3576 = vmatprep.subr.bf16.mxu1 %v4885_v58  ;;  %v4958_v57 = vld [vmem:[%s6706_s8 + $0x2e8] ss:$28 sps:$4 sm:$0xff]   ;;  %v4961_v58 = vld [vmem:[%s6706_s8 + $0x470] ss:$28 sps:$4 sm:$0xff]  }
 0x357   :  { %3536 = vmatpush1.bf16.msra.mxu0 %v4880_v59  ;;  %3577 = vmatpush1.bf16.msra.mxu1 %v4883_v60  ;;  %v4966_v59 = vld [vmem:[%s6706_s8 + $0x2b4] ss:$28 sps:$4 sm:$0xff]   ;;  %v4969_v60 = vld [vmem:[%s6706_s8 + $0x43c] ss:$28 sps:$4 sm:$0xff]  }
 0x358   :  { %3537 = vmatprep.subr.bf16.mxu0 %v4888_v61  ;;  %3578 = vmatprep.subr.bf16.mxu1 %v4891_v62  ;;  %v4964_v61 = vld [vmem:[%s6706_s8 + $0x2b0] ss:$28 sps:$4 sm:$0xff]   ;;  %v4967_v62 = vld [vmem:[%s6706_s8 + $0x438] ss:$28 sps:$4 sm:$0xff]  }
 0x35b   :  { %3538 = vmatpush1.bf16.msra.mxu0 %v4886_v63  ;;  %3579 = vmatpush1.bf16.msra.mxu1 %v4889_v0  ;;  %v4972_v63 = vld [vmem:[%s6706_s8 + $0x27c] ss:$28 sps:$4 sm:$0xff]   ;;  %v4975_v0 = vld [vmem:[%s6706_s8 + $0x404] ss:$28 sps:$4 sm:$0xff]  }
 0x35c   :  { %3539 = vmatprep.subr.bf16.mxu0 %v4894_v1  ;;  %3594 = vmatprep.subr.bf16.mxu1 %v4897_v2  ;;  %v4970_v1 = vld [vmem:[%s6706_s8 + $0x278] ss:$28 sps:$4 sm:$0xff]   ;;  %v4973_v2 = vld [vmem:[%s6706_s8 + $0x400] ss:$28 sps:$4 sm:$0xff]  }
 0x35f   :  { %3540 = vmatpush2.bf16.msra.mxu0 %v4892_v3  ;;  %3595 = vmatpush2.bf16.msra.mxu1 %v4895_v4  ;;  %v4978_v3 = vld [vmem:[%s6706_s8 + $0x244] ss:$28 sps:$4 sm:$0xff]   ;;  %v4981_v4 = vld [vmem:[%s6706_s8 + $0x3cc] ss:$28 sps:$4 sm:$0xff]  }
 0x360   :  { %3541 = vmatprep.subr.bf16.mxu0 %v4900_v5  ;;  %3605 = vmatprep.subr.bf16.mxu1 %v4903_v6  ;;  %v4976_v5 = vld [vmem:[%s6706_s8 + $0x240] ss:$28 sps:$4 sm:$0xff]   ;;  %v4979_v6 = vld [vmem:[%s6706_s8 + $0x3c8] ss:$28 sps:$4 sm:$0xff]  }
 0x362   :  { %3597 = vmatmul.mubr.bf16.vlgmr.msra.gmra.mxu1 %v6276_v34 }
 0x363   :  { %3542 = vmatpush2.bf16.msra.mxu0 %v4898_v7  ;;  %3606 = vmatpush1.bf16.msra.mxu1 %v4901_v10  ;;  %v4984_v7 = vld [vmem:[%s6706_s8 + $0x20c] ss:$28 sps:$4 sm:$0xff]   ;;  %v4987_v10 = vld [vmem:[%s6706_s8 + $0x394] ss:$28 sps:$4 sm:$0xff]  }
 0x364   :  { %3637 = vmatprep.mubr.bf16.mxu1 %v6264_v32  ;;  %3543 = vmatprep.subr.bf16.mxu0 %v4906_v11  ;;  %v4982_v11 = vld [vmem:[%s6706_s8 + $0x208] ss:$28 sps:$4 sm:$0xff]  }
 0x365   :  { %3607 = vmatprep.subr.bf16.mxu1 %v4909_v12  ;;  %v4985_v12 = vld [vmem:[%s6706_s8 + $0x390] ss:$28 sps:$4 sm:$0xff]  }
 0x367   :  { %3544 = vmatpush2.bf16.msra.mxu0 %v4904_v13  ;;  %3608 = vmatpush1.bf16.msra.mxu1 %v4907_v14  ;;  %v4990_v13 = vld [vmem:[%s6706_s8 + $0x1d4] ss:$28 sps:$4 sm:$0xff]  }
 0x368   :  { %3545 = vmatprep.subr.bf16.mxu0 %v4912_v15  ;;  %3609 = vmatprep.subr.bf16.mxu1 %v4915_v17  ;;  %v4993_v14 = vld [vmem:[%s6706_s8 + $0x554] ss:$28 sps:$4 sm:$0xff]  }
 0x369   :  { %v4988_v15 = vld [vmem:[%s6706_s8 + $0x1d0] ss:$28 sps:$4 sm:$0xff]  }
 0x36a   :  { %v4991_v17 = vld [vmem:[%s6706_s8 + $0x550] ss:$28 sps:$4 sm:$0xff]  }
 0x36b   :  { %3546 = vmatpush2.bf16.msra.mxu0 %v4910_v18  ;;  %3610 = vmatpush1.bf16.msra.mxu1 %v4913_v21  ;;  %v4994_v18 = vld [vmem:[%s6706_s8 + $0x360] ss:$28 sps:$4 sm:$0xff]  }
 0x36c   :  { %3547 = vmatprep.subr.bf16.mxu0 %v4918_v22  ;;  %3611 = vmatprep.subr.bf16.mxu1 %v4921_v23  ;;  %v4995_v21 = vld [vmem:[%s6706_s8 + $0x1a0] ss:$28 sps:$4 sm:$0xff]   ;;  %v4997_v23 = vld [vmem:[%s6706_s8 + $0x328] ss:$28 sps:$4 sm:$0xff]  }
 0x36d   :  { %v4996_v22 = vld [vmem:[%s6706_s8 + $0x520] ss:$28 sps:$4 sm:$0xff]  }
 0x36f   :  { %3548 = vmatpush2.bf16.msra.mxu0 %v4916_v24  ;;  %3612 = vmatpush1.bf16.msra.mxu1 %v4919_v25  ;;  %v4998_v24 = vld [vmem:[%s6706_s8 + $0x168] ss:$28 sps:$4 sm:$0xff]  }
 0x370   :  { %3549 = vmatprep.subr.bf16.mxu0 %v4924_v26  ;;  %3613 = vmatprep.subr.bf16.mxu1 %v4927_v27  ;;  %v4999_v25 = vld [vmem:[%s6706_s8 + $0x4e8] ss:$28 sps:$4 sm:$0xff]   ;;  %v5000_v26 = vld [vmem:[%s6706_s8 + $0x2f0] ss:$28 sps:$4 sm:$0xff]   ;;  %v5003_v27 = vld [vmem:[%s6706_s8 + $0x2b8] ss:$28 sps:$4 sm:$0xff]  }
 0x373   :  { %3550 = vmatpush2.bf16.msra.mxu0 %v4922_v30  ;;  %3614 = vmatpush1.bf16.msra.mxu1 %v4925_v31  ;;  %v5004_v30 = vld [vmem:[%s6706_s8 + $0xf8] ss:$28 sps:$4 sm:$0xff]  }
 0x374   :  { %3551 = vmatprep.subr.bf16.mxu0 %v4930_v19  ;;  %3615 = vmatprep.subr.bf16.mxu1 %v4933_v20  ;;  %v5005_v31 = vld [vmem:[%s6706_s8 + $0x478] ss:$28 sps:$4 sm:$0xff]   ;;  %v5006_v19 = vld [vmem:[%s6706_s8 + $0x280] ss:$28 sps:$4 sm:$0xff]  }
 0x375   :  { %v5007_v20 = vld [vmem:[%s6706_s8 + $0xc0] ss:$28 sps:$4 sm:$0xff]  }
 0x377   :  { %3552 = vmatpush2.bf16.msra.mxu0 %v4928_v35  ;;  %3616 = vmatpush1.bf16.msra.mxu1 %v4931_v8  ;;  %v5008_v35 = vld [vmem:[%s6706_s8 + $0x440] ss:$28 sps:$4 sm:$0xff]   ;;  %v5009_v8 = vld [vmem:[%s6706_s8 + $0x248] ss:$28 sps:$4 sm:$0xff]  }
 0x378   :  { %3553 = vmatprep.subr.bf16.mxu0 %v4936_v37  ;;  %3617 = vmatprep.subr.bf16.mxu1 %v4939_v38  ;;  %v5010_v37 = vld [vmem:[%s6706_s8 + $0x88] ss:$28 sps:$4 sm:$0xff]  }
 0x379   :  { %v5011_v38 = vld [vmem:[%s6706_s8 + $0x408] ss:$28 sps:$4 sm:$0xff]  }
 0x37b   :  { %3554 = vmatpush2.bf16.msra.mxu0 %v4934_v36  ;;  %3618 = vmatpush1.bf16.msra.mxu1 %v4937_v39  ;;  %v5012_v36 = vld [vmem:[%s6706_s8 + $0x210] ss:$28 sps:$4 sm:$0xff]  }
 0x37c   :  { %3619 = vmatprep.subr.bf16.mxu1 %v4942_v40  ;;  %3646 = vmatprep.subr.bf16.mxu0 %v4945_v41  ;;  %v5013_v39 = vld [vmem:[%s6706_s8 + $0x50] ss:$28 sps:$4 sm:$0xff]   ;;  %v5015_v41 = vld [vmem:[%s6706_s8 + $0x1d8] ss:$28 sps:$4 sm:$0xff]  }
 0x37d   :  { %v5014_v40 = vld [vmem:[%s6706_s8 + $0x3d0] ss:$28 sps:$4 sm:$0xff]  }
 0x37e   :  { %3556 = vmatmul.mubr.bf16.vlgmr.msra.gmra.mxu0 %v6274_v33 }
 0x37f   :  { %3620 = vmatpush1.bf16.msra.mxu1 %v4940_v42  ;;  %3647 = vmatpush1.bf16.msra.mxu0 %v4943_v43  ;;  %v5016_v42 = vld [vmem:[%s6706_s8 + $0x18] ss:$28 sps:$4 sm:$0xff]  }
 0x380   :  { %4317 = vmatprep.mubr.msk.bf16.mxu0 %vm1253_vm0, %v6266_v52  ;;  %3621 = vmatprep.subr.bf16.mxu1 %v4948_v44  ;;  %v5017_v43 = vld [vmem:[%s6706_s8 + $0x398] ss:$28 sps:$4 sm:$0xff]  }
 0x381   :  { %3648 = vmatprep.subr.bf16.mxu0 %v4951_v45  ;;  %v5018_v44 = vld [vmem:[%s6706_s8 + $0x558] ss:$28 sps:$4 sm:$0xff]   ;;  %v6673_v45 = vld [vmem:[%s6707_s9] sm:$0xff] }
 0x383   :  { %3622 = vmatpush2.bf16.msra.mxu1 %v4946_v46  ;;  %3649 = vmatpush1.bf16.msra.mxu0 %v4949_v47  ;;  %v2506_v46 = vrot.slane %v6673_v45, %v5976_v29  ;;  %v2510_v47 = vrot.slane %v6673_v45, %v5982_v9 }
 0x384   :  { %3623 = vmatprep.subr.bf16.mxu1 %v4954_v48  ;;  %3650 = vmatprep.subr.bf16.mxu0 %v4957_v51 }
 0x387   :  { %3624 = vmatpush2.bf16.msra.mxu1 %v4952_v53  ;;  %3651 = vmatpush1.bf16.msra.mxu0 %v4955_v54 }
 0x388   :  { %3625 = vmatprep.subr.bf16.mxu1 %v4960_v55  ;;  %3652 = vmatprep.subr.bf16.mxu0 %v4963_v56 }
 0x38b   :  { %3626 = vmatpush2.bf16.msra.mxu1 %v4958_v57  ;;  %3653 = vmatpush1.bf16.msra.mxu0 %v4961_v58 }
 0x38c   :  { %3627 = vmatprep.subr.bf16.mxu1 %v4966_v59  ;;  %3654 = vmatprep.subr.bf16.mxu0 %v4969_v60 }
 0x38f   :  { %3628 = vmatpush2.bf16.msra.mxu1 %v4964_v61  ;;  %3655 = vmatpush1.bf16.msra.mxu0 %v4967_v62 }
 0x390   :  { %3629 = vmatprep.subr.bf16.mxu1 %v4972_v63  ;;  %3656 = vmatprep.subr.bf16.mxu0 %v4975_v0 }
 0x393   :  { %3630 = vmatpush2.bf16.msra.mxu1 %v4970_v1  ;;  %3657 = vmatpush1.bf16.msra.mxu0 %v4973_v2 }
 0x394   :  { %3631 = vmatprep.subr.bf16.mxu1 %v4978_v3  ;;  %3658 = vmatprep.subr.bf16.mxu0 %v4981_v4 }
 0x397   :  { %3632 = vmatpush2.bf16.msra.mxu1 %v4976_v5  ;;  %3659 = vmatpush1.bf16.msra.mxu0 %v4979_v6 }
 0x398   :  { %3633 = vmatprep.subr.bf16.mxu1 %v4984_v7  ;;  %3660 = vmatprep.subr.bf16.mxu0 %v4987_v10 }
 0x39b   :  { %3634 = vmatpush2.bf16.msra.mxu1 %v4982_v11  ;;  %3661 = vmatpush1.bf16.msra.mxu0 %v4985_v12 }
 0x39c   :  { %3635 = vmatprep.subr.bf16.mxu1 %v4990_v13  ;;  %3676 = vmatprep.subr.bf16.mxu0 %v4993_v14 }
 0x39f   :  { %3636 = vmatpush2.bf16.msra.mxu1 %v4988_v15  ;;  %3677 = vmatpush2.bf16.msra.mxu0 %v4991_v17 }
 0x3a0   :  { %4326 = vmatprep.subr.bf16.mxu0 %v4994_v18  ;;  %3727 = vmatprep.subr.bf16.mxu1 %v5113_v16 }
 0x3a2   :  { %3638 = vmatmul.mubr.bf16.vlgmr.msra.gmra.mxu1 %v6274_v33  ;;  %3679 = vmatmul.mubr.bf16.vlgmr.msra.gmra.mxu0 %v6276_v34 }
 0x3a3   :  { %4327 = vmatpush3.bf16.msra.mxu0 %v4995_v21  ;;  %3719 = vmatprep.mubr.bf16.mxu0 %v6264_v32  ;;  %v5001_v32 = vld [vmem:[%s6706_s8 + $0x130] ss:$28 sps:$4 sm:$0xff]  }
 0x3a4   :  { %3728 = vmatpush1.bf16.msra.mxu1 %v4996_v22  ;;  %4318 = vmatprep.mubr.msk.bf16.mxu1 %vm1253_vm0, %v6266_v52  ;;  %v5002_v52 = vld [vmem:[%s6706_s8 + $0x4b0] ss:$28 sps:$4 sm:$0xff]   ;;  %s5114_s8 = smov [#allocation4]  }
 0x3a5   :  { %4328 = vmatprep.subr.bf16.mxu0 %v4997_v23  ;;  %3729 = vmatprep.subr.bf16.mxu1 %v5113_v16  ;;  %s3834_s9 = sshll.u32 %s5114_s8, 4  ;;  %s3835_s9 = int_to_ptr.vmem [resolvable:$true] %s3834_s9 }
 0x3a6   :  { %s5049_s22 = scalar_lea.vmem %s3835_s9, 128  ;;  %p5054_p1 = scmp.lt.s32.totalorder %s3835_s9, %s3835_s9 }
 0x3a7   :  { %4329 = vmatpush3.bf16.msra.mxu0 %v4998_v24  ;;  %p5050_p0 = scmp.ne.s32.totalorder %s3835_s9, %s5049_s22  ;;  %p5055_p2 = scmp.lt.s32.totalorder %s5049_s22, %s5049_s22 }
 0x3a8   :  { %3730 = vmatpush1.bf16.msra.mxu1 %v4999_v25  ;;  %4330 = vmatprep.subr.bf16.mxu0 %v5000_v26 }
 0x3a9   :  { %3731 = vmatprep.subr.bf16.mxu1 %v5113_v16  ;;  %p5056_p3 = por %p5055_p2, %p5054_p1 }
 0x3ab   :  { %4331 = vmatpush3.bf16.msra.mxu0 %v5001_v32  ;;  %p5057_p4 = pnand %p5056_p3, %p5050_p0 }
 0x3ac   :  { %3732 = vmatpush1.bf16.msra.mxu1 %v5002_v52  ;;  %4332 = vmatprep.subr.bf16.mxu0 %v5003_v27 }
 0x3ad   :  { %3733 = vmatprep.subr.bf16.mxu1 %v5113_v16 }
 0x3af   :  { %4333 = vmatpush3.bf16.msra.mxu0 %v5004_v30 }
 0x3b0   :  { %3734 = vmatpush1.bf16.msra.mxu1 %v5005_v31  ;;  %4334 = vmatprep.subr.bf16.mxu0 %v5006_v19 }
 0x3b1   :  { %3735 = vmatprep.subr.bf16.mxu1 %v5113_v16 }
 0x3b3   :  { %4335 = vmatpush3.bf16.msra.mxu0 %v5007_v20 }
 0x3b4   :  { %3736 = vmatpush1.bf16.msra.mxu1 %v5008_v35  ;;  %4336 = vmatprep.subr.bf16.mxu0 %v5009_v8 }
 0x3b5   :  { %3737 = vmatprep.subr.bf16.mxu1 %v5113_v16 }
 0x3b7   :  { %4337 = vmatpush3.bf16.msra.mxu0 %v5010_v37 }
 0x3b8   :  { %3738 = vmatpush1.bf16.msra.mxu1 %v5011_v38  ;;  %4338 = vmatprep.subr.bf16.mxu0 %v5012_v36 }
 0x3b9   :  { %3739 = vmatprep.subr.bf16.mxu1 %v5113_v16 }
 0x3bb   :  { %4339 = vmatpush3.bf16.msra.mxu0 %v5013_v39 }
 0x3bc   :  { %3740 = vmatpush1.bf16.msra.mxu1 %v5014_v40  ;;  %4340 = vmatprep.subr.bf16.mxu0 %v5015_v41 }
 0x3bd   :  { %3741 = vmatprep.subr.bf16.mxu1 %v5113_v16 }
 0x3bf   :  { %4341 = vmatpush3.bf16.msra.mxu0 %v5016_v42 }
 0x3c0   :  { %3742 = vmatpush1.bf16.msra.mxu1 %v5017_v43 }
 0x3c1   :  { %3757 = vmatprep.subr.bf16.mxu1 %v5113_v16 }
 0x3c2   :  { %3720 = vmatmul.mubr.bf16.vlgmr.msra.gmra.mxu0 %v6274_v33 }
 0x3c4   :  { %3758 = vmatpush2.bf16.msra.mxu1 %v5018_v44 }
 0x3c7   :  { %3760 = vmatmul.mubr.bf16.vlgmr.msra.gmra.mxu1 %v6276_v34 }
 0x3fe   :  { %v3475_v48 = vpop.f32.mrf.mxu1  ;;  %v3516_v51 = vpop.f32.mrf.mxu0 }
 0x3ff   :  { %v3476_v53 = vadd.f32 %v3475_v48, %v2506_v46 }
 0x400   :  { %v3477_v16 = vpop.f32.mrf.mxu1  ;;  %v3518_v54 = vpop.f32.mrf.mxu0 }
 0x401   :  { %v3517_v33 = vadd.f32 %v3516_v51, %v3476_v53  ;;  %v3478_v55 = vadd.f32 %v3477_v16, %v2510_v47 }
 0x402   :  { %v3479_v56 = vpop.f32.mrf.mxu1  ;;  %v3520_v34 = vpop.f32.mrf.mxu0 }
 0x403   :  { %v4319_v57 = vmul.f32 -1.442695, %v3517_v33  ;;  %v3519_v58 = vadd.f32 %v3518_v54, %v3478_v55 }
 0x404   :  { %v3480_v59 = vpop.f32.mrf.mxu1  ;;  %v3521_v60 = vpop.f32.mrf.mxu0 }
 0x405   :  { %5021 = vpow2.f32 %v4319_v57  ;;  %v4320_v61 = vmul.f32 -1.442695, %v3519_v58 }
 0x407   :  { %5023 = vpow2.f32 %v4320_v61 }
 0x412   :  { %v5022_v29 = vpop.eup %5021 }
 0x413   :  { %v3788_v62 = vadd.f32 1.0, %v5022_v29 }
 0x414   :  { %v5024_v63 = vpop.eup %5023 }
 0x415   :  { %5025 = vrcp.f32 %v3788_v62  ;;  %v3789_v9 = vadd.f32 1.0, %v5024_v63 }
 0x417   :  { %5027 = vrcp.f32 %v3789_v9 }
 0x422   :  { %v5026_v0 = vpop.eup %5025  ;;  %v3598_v1 = vpop.f32.mrf.mxu1 }
 0x423   :  { %3809 = vst [vmem:[#allocation2] sm:$0xff] %v5026_v0 }
 0x424   :  { %v5028_v2 = vpop.eup %5027  ;;  %v3600_v3 = vpop.f32.mrf.mxu1 }
 0x425   :  { %3810 = vst [vmem:[#allocation2 + $0x8] sm:$0xff] %v5028_v2 }
 0x426   :  { %v3602_v4 = vpop.f32.mrf.mxu1 }
 0x428   :  { %v3603_v5 = vpop.f32.mrf.mxu1 }
 0x429   :  { %5060 = shalt.err (!%p5057_p4)
}
 0x42a   :  { %3837 = dma.vmem_to_hbm [thread:$0]  %s3835_s9, 128, %s6709_s11, [#allocation5]  }
 0x42b   :  { %s5115_s25 = smov [#allocation6]  }
 0x42c   :  { %s3844_s3 = sshll.u32 %s5115_s25, 4  ;;  %s3845_s3 = int_to_ptr.vmem [resolvable:$true] %s3844_s3 }
 0x42d   :  { %s5069_s4 = scalar_lea.vmem %s3845_s3, 128  ;;  %p5074_p6 = scmp.lt.s32.totalorder %s3845_s3, %s3845_s3 }
 0x42e   :  { %p5070_p5 = scmp.ne.s32.totalorder %s3845_s3, %s5069_s4  ;;  %p5075_p7 = scmp.lt.s32.totalorder %s5069_s4, %s5069_s4 }
 0x430   :  { %p5076_p8 = por %p5075_p7, %p5074_p6 }
 0x432   :  { %p5077_p9 = pnand %p5076_p8, %p5070_p5 }
 0x434   :  { %5080 = shalt.err (!%p5077_p9)
}
 0x435   :  { %3847 = dma.vmem_to_hbm [thread:$0]  %s3845_s3, 128, %s6710_s12, [#allocation5]   ;;  %v2514_v6 = vrot.slane %v6673_v45, %v5988_v49  ;;  %v2518_v7 = vrot.slane %v6673_v45, %v5991_v50  ;;  %v2521_v50 = vsub.s32 4, %v5973_v28  ;;  %v2525_v26 = vsub.s32 5, %v5973_v28 }
 0x436   :  { %v2529_v53 = vsub.s32 6, %v5973_v28  ;;  %s5116_s11 = smov [#allocation2]  }
 0x437   :  { %v2522_v32 = vrot.slane %v6673_v45, %v2521_v50  ;;  %v2526_v52 = vrot.slane %v6673_v45, %v2525_v26  ;;  %s3824_s12 = sshll.u32 %s5116_s11, 4  ;;  %s3825_s12 = int_to_ptr.vmem [resolvable:$true] %s3824_s12 }
 0x438   :  { %v2530_v54 = vrot.slane %v6673_v45, %v2529_v53  ;;  %s5089_s26 = scalar_lea.vmem %s3825_s12, 896  ;;  %p5094_p11 = scmp.lt.s32.totalorder %s3825_s12, %s3825_s12 }
 0x439   :  { %p5090_p10 = scmp.ne.s32.totalorder %s3825_s12, %s5089_s26  ;;  %p5095_p12 = scmp.lt.s32.totalorder %s5089_s26, %s5089_s26 }
 0x43b   :  { %p5096_p13 = por %p5095_p12, %p5094_p11 }
 0x43d   :  { %p5097_p0 = pnand %p5096_p13, %p5090_p10 }
 0x43e   :  { %v3557_v10 = vpop.f32.mrf.mxu0 }
 0x43f   :  { %v3558_v11 = vadd.f32 %v3557_v10, %v2514_v6 }
 0x440   :  { %v3559_v12 = vpop.f32.mrf.mxu0 }
 0x441   :  { %v3599_v13 = vadd.f32 %v3598_v1, %v3558_v11  ;;  %v3560_v14 = vadd.f32 %v3559_v12, %v2518_v7 }
 0x442   :  { %v3561_v15 = vpop.f32.mrf.mxu0 }
 0x443   :  { %v4321_v17 = vmul.f32 -1.442695, %v3599_v13  ;;  %v3601_v18 = vadd.f32 %v3600_v3, %v3560_v14 }
 0x444   :  { %v3562_v21 = vpop.f32.mrf.mxu0 }
 0x445   :  { %5029 = vpow2.f32 %v4321_v17  ;;  %v4322_v22 = vmul.f32 -1.442695, %v3601_v18 }
 0x447   :  { %5031 = vpow2.f32 %v4322_v22 }
 0x452   :  { %v5030_v23 = vpop.eup %5029 }
 0x453   :  { %v3790_v24 = vadd.f32 1.0, %v5030_v23 }
 0x454   :  { %v5032_v25 = vpop.eup %5031 }
 0x455   :  { %5033 = vrcp.f32 %v3790_v24  ;;  %v3791_v49 = vadd.f32 1.0, %v5032_v25 }
 0x457   :  { %5035 = vrcp.f32 %v3791_v49 }
 0x462   :  { %v5034_v27 = vpop.eup %5033  ;;  %v3639_v30 = vpop.f32.mrf.mxu1 }
 0x463   :  { %v3680_v31 = vpop.f32.mrf.mxu0  ;;  %3811 = vst [vmem:[#allocation2 + $0x10] sm:$0xff] %v5034_v27  ;;  %v3640_v19 = vadd.f32 %v3639_v30, %v2522_v32 }
 0x464   :  { %v5036_v20 = vpop.eup %5035  ;;  %v3641_v35 = vpop.f32.mrf.mxu1 }
 0x465   :  { %v3682_v8 = vpop.f32.mrf.mxu0  ;;  %3812 = vst [vmem:[#allocation2 + $0x18] sm:$0xff] %v5036_v20  ;;  %v3681_v37 = vadd.f32 %v3680_v31, %v3640_v19  ;;  %v3642_v38 = vadd.f32 %v3641_v35, %v2526_v52 }
 0x466   :  { %v3643_v36 = vpop.f32.mrf.mxu1 }
 0x467   :  { %v3684_v39 = vpop.f32.mrf.mxu0  ;;  %v4323_v40 = vmul.f32 -1.442695, %v3681_v37  ;;  %v3683_v41 = vadd.f32 %v3682_v8, %v3642_v38 }
 0x468   :  { %v3644_v42 = vpop.f32.mrf.mxu1 }
 0x469   :  { %v3685_v43 = vpop.f32.mrf.mxu0  ;;  %5037 = vpow2.f32 %v4323_v40  ;;  %v4324_v44 = vmul.f32 -1.442695, %v3683_v41 }
 0x46b   :  { %5039 = vpow2.f32 %v4324_v44 }
 0x476   :  { %v5038_v46 = vpop.eup %5037 }
 0x477   :  { %v3792_v47 = vadd.f32 1.0, %v5038_v46 }
 0x478   :  { %v5040_v48 = vpop.eup %5039 }
 0x479   :  { %5041 = vrcp.f32 %v3792_v47  ;;  %v3793_v51 = vadd.f32 1.0, %v5040_v48 }
 0x47b   :  { %5043 = vrcp.f32 %v3793_v51 }
 0x482   :  { %v4342_v16 = vpop.f32.mrf.mxu0 }
 0x484   :  { %v4343_v33 = vpop.f32.mrf.mxu0 }
 0x485   :  { %v4344_v55 = vadd.f32 %v4343_v33, %v4342_v16 }
 0x486   :  { %v5042_v56 = vpop.eup %5041  ;;  %v4345_v34 = vpop.f32.mrf.mxu0 }
 0x487   :  { %3813 = vst [vmem:[#allocation2 + $0x20] sm:$0xff] %v5042_v56  ;;  %v3722_v57 = vadd.f32 %v4344_v55, %v2530_v54  ;;  %v3761_v58 = vpop.f32.mrf.mxu1 }
 0x488   :  { %v5044_v59 = vpop.eup %5043  ;;  %v4346_v60 = vpop.f32.mrf.mxu0 }
 0x489   :  { %3814 = vst [vmem:[#allocation2 + $0x28] sm:$0xff] %v5044_v59  ;;  %v3762_v61 = vadd.f32 %v3761_v58, %v3722_v57  ;;  %v3763_v29 = vpop.f32.mrf.mxu1 }
 0x48b   :  { %v4325_v62 = vmul.f32 -1.442695, %v3762_v61  ;;  %v3764_v63 = vpop.f32.mrf.mxu1 }
 0x48d   :  { %5045 = vpow2.f32 %v4325_v62  ;;  %v3765_v9 = vpop.f32.mrf.mxu1 }
 0x49a   :  { %v5046_v28 = vpop.eup %5045 }
 0x49b   :  { %v3794_v0 = vadd.f32 1.0, %v5046_v28 }
 0x49d   :  { %5047 = vrcp.f32 %v3794_v0 }
 0x4aa   :  { %v5048_v45 = vpop.eup %5047 }
 0x4ab   :  { %3815 = vst [vmem:[#allocation2 + $0x30] sm:$0xff] %v5048_v45 }
 0x4ac   :  { %5100 = shalt.err (!%p5097_p0)
}
 0x4ad   :  { %3827 = dma.vmem_to_hbm [thread:$0]  %s3825_s12, 896, %s6708_s10, [#allocation3]  }
 0x4ae   :  { %5109 = dma.done.wait [#allocation3], 896  }
 0x4af   :  { %5110 = vsyncadd [#allocation3], 4294966400 }
 0x4b0   :  { %5111 = dma.done.wait [#allocation5], 256  }
 0x4b1   :  { %5112 = vsyncadd [#allocation5], 4294967040 }
 0x4b2   :  { %3857 = vsyncpa [#allocation3], 1 }
 0x4b3   :  { %3858 = vsyncpa [#allocation5], 1 }

</bundles_post_ra>
